<compile_context>
chip_gen: v5e
topology: v5e:2x2
jax: 0.10.0
libtpu: 0.0.40
codegen_flags: <defaults>
</compile_context>

<pallas_src>
import numpy as np
import jax
import jax.numpy as jnp
from jax.experimental import pallas as pl
from jax.experimental.pallas import tpu as pltpu


def _cdiv(a, b):
    return -(-a // b)


def _round_up(a, b):
    return _cdiv(a, b) * b


def _make_interp_matrix(in_size: int, out_size: int, scale: float) -> np.ndarray:
    """1-D linear interpolation matrix, PyTorch align_corners=False semantics."""
    R = np.zeros((out_size, in_size), dtype=np.float32)
    for i in range(out_size):
        src = (i + 0.5) * scale - 0.5
        if src < 0.0:
            src = 0.0                      # PyTorch clamps negative source coords
        i0 = min(int(np.floor(src)), in_size - 1)
        i1 = min(i0 + 1, in_size - 1)
        frac = src - i0
        R[i, i0] += 1.0 - frac
        R[i, i1] += frac
    return R


def _bf16_exact(a: np.ndarray) -> bool:
    a32 = np.asarray(a, np.float32)
    return bool(np.array_equal(a32.astype(jnp.bfloat16).astype(np.float32), a32))


def _vmem_capacity_bytes() -> int:
    try:
        info = pltpu.get_tpu_info()
        cap = int(getattr(info, "vmem_capacity_bytes", 0) or 0)
        if cap > 0:
            return cap
    except Exception:
        pass
    return 64 * 1024 * 1024  # v7x per-TC capacity: the smallest current generation


def _make_matmul_kernel(cast_bf16: bool):
    def kernel(w_ref, x_ref, o_ref):
        x = x_ref[...]
        if cast_bf16:
            x = x.astype(jnp.bfloat16)     # bf16 MXU operands, f32 accumulation
        o_ref[...] = jnp.dot(
            x, w_ref[...], preferred_element_type=jnp.float32
        ).astype(o_ref.dtype)
    return kernel


def _rowblock_matmul(x2d: jax.Array, w_np: np.ndarray, *, use_bf16: bool) -> jax.Array:
    """out = x2d @ w with the weight VMEM-resident and a grid over row blocks.

    The weight's minor dim is zero-padded to a multiple of 128 lanes (full-width
    vst stores); the padding is sliced off before returning.
    """
    M, K = x2d.shape
    Kw, N = w_np.shape
    assert K == Kw
    N_pad = _round_up(N, 128)
    if N_pad != N:
        w_np = np.pad(np.asarray(w_np, np.float32), ((0, 0), (0, N_pad - N)))
    w_dtype = jnp.bfloat16 if use_bf16 else jnp.float32
    w = jnp.asarray(w_np, dtype=w_dtype)

    dsz = x2d.dtype.itemsize
    sub = 16 if x2d.dtype == jnp.bfloat16 else 8
    w_bytes = K * N_pad * np.dtype(w_dtype).itemsize

    # VMEM-budget-driven batch block (conservatively count the weight twice
    # even though we request a single buffer for it below).
    budget = min(int(0.7 * _vmem_capacity_bytes()), 100 * 1024 * 1024)
    per_row = 2 * (K + N_pad) * dsz               # double-buffered in + out rows
    avail = max(budget - 2 * w_bytes, per_row * sub)
    bb_cap = min(2048, max(sub, (avail // per_row) // sub * sub))

    # >=2 grid steps when the batch allows, so both v7x TensorCores get work;
    # blocks are load-balanced (round_up(cdiv)) instead of a fixed cap.
    min_steps = 2 if M >= 2 * sub else 1
    n_steps = max(min_steps, _cdiv(M, bb_cap))
    if n_steps <= 1:
        BB = M
    else:
        BB = max(sub, min(bb_cap, _round_up(_cdiv(M, n_steps), sub)))
        if BB >= M:
            BB = M
    grid = (_cdiv(M, BB),)

    vmem_limit = int(min(max(2 * w_bytes + per_row * BB + (2 << 20),
                             32 * 1024 * 1024), 128 * 1024 * 1024))

    kernel = _make_matmul_kernel(use_bf16 and x2d.dtype != jnp.bfloat16)
    cost = pl.CostEstimate(
        flops=2 * M * K * N_pad,
        transcendentals=0,
        bytes_accessed=M * (K + N_pad) * dsz + w_bytes,
    )

    def build(weight_pipeline_mode):
        if weight_pipeline_mode is None:
            w_spec = pl.BlockSpec((K, N_pad), lambda b: (0, 0))
        else:
            w_spec = pl.BlockSpec((K, N_pad), lambda b: (0, 0),
                                  pipeline_mode=weight_pipeline_mode)
        return pl.pallas_call(
            kernel,
            out_shape=jax.ShapeDtypeStruct((M, N_pad), x2d.dtype),
            grid_spec=pltpu.PrefetchScalarGridSpec(
                num_scalar_prefetch=0,
                grid=grid,
                in_specs=[w_spec,
                          pl.BlockSpec((BB, K), lambda b: (b, 0))],
                out_specs=pl.BlockSpec((BB, N_pad), lambda b: (b, 0)),
            ),
            compiler_params=pltpu.CompilerParams(
                dimension_semantics=("parallel",),
                vmem_limit_bytes=vmem_limit,
            ),
            cost_estimate=cost,
        )

    try:
        # Weight block never changes (constant index_map): single-buffer it to
        # free VMEM for larger batch blocks.
        out = build(pl.Buffered(buffer_count=1))(w, x2d)
    except Exception:
        out = build(None)(w, x2d)

    if N_pad != N:
        out = out[:, :N]
    return out


def interpolate_bilinear(x: jax.Array, size=None, scale_factor=None) -> jax.Array:
    """Equivalent of Interpolate(size/scale_factor, mode='bilinear')(x), NCHW."""
    # TODO(synk): only mode='bilinear' (align_corners=False) is implemented;
    # 'nearest'/'bicubic'/'area'/'trilinear' would need their own weight build.
    Nb, C, H, W = x.shape

    if size is not None:
        H_out, W_out = (size, size) if isinstance(size, int) else tuple(size)
        scale_h, scale_w = H / H_out, W / W_out
    else:
        if np.isscalar(scale_factor):
            sf_h = sf_w = float(scale_factor)
        else:
            sf_h, sf_w = (float(s) for s in scale_factor)
        H_out = int(np.floor(H * sf_h))
        W_out = int(np.floor(W * sf_w))
        scale_h, scale_w = 1.0 / sf_h, 1.0 / sf_w

    ry = _make_interp_matrix(H, H_out, scale_h)       # (H_out, H)
    rx = _make_interp_matrix(W, W_out, scale_w)       # (W_out, W)

    B = Nb * C
    HW_in, HW_out = H * W, H_out * W_out
    dsz = x.dtype.itemsize

    sep_exact = _bf16_exact(ry) and _bf16_exact(rx)
    bf16_candidate = sep_exact or x.dtype == jnp.bfloat16

    # Roofline-based path selection (crossover quoted for v5e, the earliest
    # generation to flip MXU-bound; separable is never wrong, just 2 passes).
    HW_out_pad = _round_up(HW_out, 128)
    kron_bytes = HW_in * HW_out_pad * (2 if bf16_candidate else 4)
    intensity = 2.0 * HW_in * HW_out / (dsz * (HW_in + HW_out))
    crossover = 240.0 if bf16_candidate else 60.0

    if kron_bytes <= 8 * 1024 * 1024 and intensity <= crossover:
        # Fused Kronecker weight: one lane-dense MXU matmul per batch block.
        kt = np.kron(ry, rx).T                        # (H*W, H_out*W_out)
        use_bf16 = x.dtype == jnp.bfloat16 or _bf16_exact(kt)
        out = _rowblock_matmul(x.reshape(B, HW_in), kt, use_bf16=use_bf16)
        return out.reshape(Nb, C, H_out, W_out)

    # Separable fallback: width pass, transpose, height pass (all lane-dense).
    use_bf16 = bf16_candidate
    t = _rowblock_matmul(x.reshape(B * H, W), rx.T, use_bf16=use_bf16)   # (B*H, W_out)
    t = t.reshape(B, H, W_out).transpose(0, 2, 1).reshape(B * W_out, H)
    o = _rowblock_matmul(t, ry.T, use_bf16=use_bf16)                     # (B*W_out, H_out)
    o = o.reshape(B, W_out, H_out).transpose(0, 2, 1)
    return o.reshape(Nb, C, H_out, W_out)


if __name__ == "__main__":
    key = jax.random.PRNGKey(0)
    k1, k2, k3 = jax.random.split(key, 3)

    # Test 1: scale_factor=2 on (2,4,16,16) — kron path with bf16 MXU operands.
    x1 = jax.random.normal(k1, (2, 4, 16, 16), dtype=jnp.float32)
    y1 = jax.block_until_ready(interpolate_bilinear(x1, scale_factor=2.0))
    assert y1.shape == (2, 4, 32, 32), y1.shape
    ry1 = _make_interp_matrix(16, 32, 0.5)
    rx1 = _make_interp_matrix(16, 32, 0.5)
    x1_bf = np.asarray(jnp.asarray(x1, jnp.bfloat16).astype(jnp.float32))
    ref1 = np.einsum("oh,bchw,xw->bcox", ry1, x1_bf, rx1)
    np.testing.assert_allclose(np.asarray(y1), ref1, rtol=1e-3, atol=1e-3)

    # Test 2: fractional scale factor -> f32 weights + lane-padded minor dims.
    x2 = jax.random.normal(k2, (2, 4, 16, 16), dtype=jnp.float32)
    y2 = jax.block_until_ready(interpolate_bilinear(x2, scale_factor=1.5))
    assert y2.shape == (2, 4, 24, 24), y2.shape
    ry2 = _make_interp_matrix(16, 24, 1.0 / 1.5)
    rx2 = _make_interp_matrix(16, 24, 1.0 / 1.5)
    ref2 = np.einsum("oh,bchw,xw->bcox", ry2, np.asarray(x2), rx2)
    np.testing.assert_allclose(np.asarray(y2), ref2, rtol=2e-2, atol=2e-2)

    # Test 3: larger map triggers the roofline fallback to the separable path.
    x3 = jax.random.normal(k3, (1, 2, 32, 32), dtype=jnp.float32)
    y3 = jax.block_until_ready(interpolate_bilinear(x3, scale_factor=2.0))
    assert y3.shape == (1, 2, 64, 64), y3.shape
    ry3 = _make_interp_matrix(32, 64, 0.5)
    rx3 = _make_interp_matrix(32, 64, 0.5)
    ref3 = np.einsum("oh,bchw,xw->bcox", ry3, np.asarray(x3), rx3)
    np.testing.assert_allclose(np.asarray(y3), ref3, rtol=2e-2, atol=2e-2)

    print("KERNEL_OK")
</pallas_src>

<mosaic_0001>
module attributes {stable_mosaic.version = 11 : i64} {
  func.func @kernel(%arg0: i32, %arg1: memref<256x1024xbf16, #tpu.memory_space<vmem>>, %arg2: memref<8x256xf32, #tpu.memory_space<vmem>>, %arg3: memref<8x1024xf32, #tpu.memory_space<vmem>>) attributes {dimension_semantics = [#tpu.dimension_semantics<parallel>], iteration_bounds = array<i64: 1>, scalar_prefetch = 0 : i64, scratch_operands = 0 : i64, tpu.core_type = #tpu.core_type<tc>, window_params = [{pipeline_mode = #tpu.pipeline_mode<synchronous>, transform_indices = @transform_0, window_bounds = array<i64: 256, 1024>}, {transform_indices = @transform_1, window_bounds = array<i64: 8, 256>}, {transform_indices = @transform_2, window_bounds = array<i64: 8, 1024>}]} {
    %c0 = arith.constant 0 : index
    %c0_0 = arith.constant 0 : index
    %0 = vector.load %arg2[%c0, %c0_0] : memref<8x256xf32, #tpu.memory_space<vmem>>, vector<8x256xf32>
    %1 = arith.truncf %0 : vector<8x256xf32> to vector<8x256xbf16>
    %c0_1 = arith.constant 0 : index
    %c0_2 = arith.constant 0 : index
    %2 = vector.load %arg1[%c0_1, %c0_2] : memref<256x1024xbf16, #tpu.memory_space<vmem>>, vector<256x1024xbf16>
    %cst = arith.constant dense<0.000000e+00> : vector<8x1024xf32>
    %3 = tpu.matmul %1, %2, %cst {dimension_numbers = #tpu.dot_dimension_numbers<[1], [0], [0], [1], [0, 0, 1, 1], [], []>} : vector<8x256xbf16>, vector<256x1024xbf16>, vector<8x1024xf32> -> vector<8x1024xf32>
    %c0_3 = arith.constant 0 : index
    %c0_4 = arith.constant 0 : index
    %4 = vector.load %arg3[%c0_3, %c0_4] : memref<8x1024xf32, #tpu.memory_space<vmem>>, vector<8x1024xf32>
    tpu.vector_store %arg3[%c0_3, %c0_4], %3 {strides = array<i32>} : memref<8x1024xf32, #tpu.memory_space<vmem>>, vector<8x1024xf32>,
    return
  }
  func.func @transform_0(%arg0: i32) -> (i32, i32) {
    %c0_i32 = arith.constant 0 : i32
    %c0_i32_0 = arith.constant 0 : i32
    %c0_i32_1 = arith.constant 0 : i32
    return %c0_i32, %c0_i32_0 : i32, i32
  }
  func.func @transform_1(%arg0: i32) -> (i32, i32) {
    %c0_i32 = arith.constant 0 : i32
    %c0_i32_0 = arith.constant 0 : i32
    return %arg0, %c0_i32 : i32, i32
  }
  func.func @transform_2(%arg0: i32) -> (i32, i32) {
    %c0_i32 = arith.constant 0 : i32
    %c0_i32_0 = arith.constant 0 : i32
    return %arg0, %c0_i32 : i32, i32
  }
}

module attributes {stable_mosaic.version = 11 : i64} {
  func.func @kernel(%arg0: i32, %arg1: memref<256x1024xbf16, #tpu.memory_space<vmem>>, %arg2: memref<8x256xf32, #tpu.memory_space<vmem>>, %arg3: memref<8x1024xf32, #tpu.memory_space<vmem>>) attributes {dimension_semantics = [#tpu.dimension_semantics<parallel>], iteration_bounds = array<i64: 1>, scalar_prefetch = 0 : i64, scratch_operands = 0 : i64, tpu.core_type = #tpu.core_type<tc>, window_params = [{pipeline_mode = #tpu.pipeline_mode<synchronous>, transform_indices = @transform_0, window_bounds = array<i64: 256, 1024>}, {transform_indices = @transform_1, window_bounds = array<i64: 8, 256>}, {transform_indices = @transform_2, window_bounds = array<i64: 8, 1024>}]} {
    %c0 = arith.constant 0 : index
    %c0_0 = arith.constant 0 : index
    %0 = vector.load %arg2[%c0, %c0_0] : memref<8x256xf32, #tpu.memory_space<vmem>>, vector<8x256xf32>
    %1 = arith.truncf %0 : vector<8x256xf32> to vector<8x256xbf16>
    %c0_1 = arith.constant 0 : index
    %c0_2 = arith.constant 0 : index
    %2 = vector.load %arg1[%c0_1, %c0_2] : memref<256x1024xbf16, #tpu.memory_space<vmem>>, vector<256x1024xbf16>
    %cst = arith.constant dense<0.000000e+00> : vector<8x1024xf32>
    %3 = tpu.matmul %1, %2, %cst {dimension_numbers = #tpu.dot_dimension_numbers<[1], [0], [0], [1], [0, 0, 1, 1], [], []>} : vector<8x256xbf16>, vector<256x1024xbf16>, vector<8x1024xf32> -> vector<8x1024xf32>
    %c0_3 = arith.constant 0 : index
    %c0_4 = arith.constant 0 : index
    %4 = vector.load %arg3[%c0_3, %c0_4] : memref<8x1024xf32, #tpu.memory_space<vmem>>, vector<8x1024xf32>
    tpu.vector_store %arg3[%c0_3, %c0_4], %3 {strides = array<i32>} : memref<8x1024xf32, #tpu.memory_space<vmem>>, vector<8x1024xf32>,
    return
  }
  func.func @transform_0(%arg0: i32) -> (i32, i32) {
    %c0_i32 = arith.constant 0 : i32
    %c0_i32_0 = arith.constant 0 : i32
    %c0_i32_1 = arith.constant 0 : i32
    return %c0_i32, %c0_i32_0 : i32, i32
  }
  func.func @transform_1(%arg0: i32) -> (i32, i32) {
    %c0_i32 = arith.constant 0 : i32
    %c0_i32_0 = arith.constant 0 : i32
    return %arg0, %c0_i32 : i32, i32
  }
  func.func @transform_2(%arg0: i32) -> (i32, i32) {
    %c0_i32 = arith.constant 0 : i32
    %c0_i32_0 = arith.constant 0 : i32
    return %arg0, %c0_i32 : i32, i32
  }
}

</mosaic_0001>

<bundles_post_ra>
// kernel: tpu_custom_call.1
= control target key start
LH: loop header
LB: loop body
LE: loop exit
PB: predicated region body
PF: predicated region fallthrough
CT: control target
= control target key end

     0   :  { %7 = vsyncpa [#allocation3], 0  ;;  %s1820_s0 = inlined_call_operand.hbm [shape: bf16[256,1024], index: 0, kind: input, shape index: {}]   ;;  %s1821_s1 = inlined_call_operand.hbm [shape: f32[8,256], index: 1, kind: input, shape index: {}]   ;;  %s1822_s2 = inlined_call_operand.hbm [shape: f32[8,1024], index: 2, kind: output, shape index: {}]  }
   0x1   :  { %8 = vsyncpa [#allocation6], 0 }
   0x2   :  { %9 = vsyncpa [#allocation4], 0  ;;  %s14_s11 = sshll.u32 %s1820_s0, 4  ;;  %s1771_s12 = smov [#allocation2]   ;;  %s15_s11 = int_to_ptr.hbm [resolvable:$true] %s14_s11 }
   0x3   :  { %s16_s13 = sshll.u32 %s1771_s12, 4  ;;  %s28_s16 = sshll.u32 %s1821_s1, 4  ;;  %s17_s13 = int_to_ptr.vmem [resolvable:$true] %s16_s13  ;;  %s29_s16 = int_to_ptr.hbm [resolvable:$true] %s28_s16 }
   0x4   :  { %s1772_s17 = smov 512   ;;  %s1773_s18 = smov 32  }
   0x5   :  { %22 = dma.hbm_to_vmem [thread:$0]  %s15_s11, 16384, %s17_s13, [#allocation3], %s1772_s17, %s1772_s17, %s1773_s18  }
   0x6   :  { %s1774_s19 = smov [#allocation5]  }
   0x7   :  { %s30_s20 = sshll.u32 %s1774_s19, 4  ;;  %s31_s20 = int_to_ptr.vmem [resolvable:$true] %s30_s20 }
   0x8   :  { %33 = dma.hbm_to_vmem [thread:$0]  %s29_s16, 256, %s31_s20, [#allocation6]  }
   0x9   :  { %1765 = dma.done.wait [#allocation3], 16384  }
   0xa   :  { %1766 = vsyncadd [#allocation3], 4294950912 }
   0xb   :  { %1767 = dma.done.wait [#allocation6], 256  }
   0xc   :  { %1768 = vsyncadd [#allocation6], 4294967040  ;;  %v1274_v0 = vld [vmem:[#allocation2 + $0x1c0] sm:$0xf]  ;;  %v1616_v5 = vld [vmem:[#allocation2 + $0x1c4] sm:$0xf] }
   0xd   :  { %v1620_v1 = vld [vmem:[#allocation2 + $0x1dc] sm:$0xf0]  ;;  %v1276_v6 = vld [vmem:[#allocation2 + $0x1e0] sm:$0xf0]  ;;  %s1775_s0 = smov [#allocation7]   ;;  %s1037_s23 = sshll.u32 %s1822_s2, 4  ;;  %s1038_s23 = int_to_ptr.hbm [resolvable:$true] %s1037_s23 }
   0xe   :  { %v1530_v2 = vld [vmem:[#allocation2 + $0x3c0] sm:$0xf]  ;;  %v1275_v3 = vor.u32 %v1620_v1, %v1274_v0  ;;  %v1279_v8 = vor.u32 %v1616_v5, %v1276_v6  ;;  %v1680_v9 = vld [vmem:[#allocation2 + $0x3c4] sm:$0xf]  ;;  %s1035_s1 = sshll.u32 %s1775_s0, 4  ;;  %s1036_s1 = int_to_ptr.vmem [resolvable:$true] %s1035_s1 }
   0xf   :  { %v1684_v4 = vld [vmem:[#allocation2 + $0x3dc] sm:$0xf0]  ;;  %v1532_v10 = vld [vmem:[#allocation2 + $0x3e0] sm:$0xf0] }
  0x10   :  { %v1531_v7 = vor.u32 %v1684_v4, %v1530_v2  ;;  %v1242_v11 = vld [vmem:[#allocation2 + $0x180] sm:$0xf]  ;;  %814 = vmatpush.bf16.msra.mxu0 %v1275_v3  ;;  %v1535_v12 = vor.u32 %v1680_v9, %v1532_v10  ;;  %840 = vmatpush.bf16.msra.mxu2 %v1279_v8  ;;  %v1608_v18 = vld [vmem:[#allocation2 + $0x184] sm:$0xf] }
  0x11   :  { %v1612_v13 = vld [vmem:[#allocation2 + $0x19c] sm:$0xf0]  ;;  %v1244_v19 = vld [vmem:[#allocation2 + $0x1a0] sm:$0xf0] }
  0x12   :  { %v1498_v14 = vld [vmem:[#allocation2 + $0x380] sm:$0xf]  ;;  %827 = vmatpush.bf16.msra.mxu1 %v1531_v7  ;;  %v1243_v16 = vor.u32 %v1612_v13, %v1242_v11  ;;  %v1672_v20 = vld [vmem:[#allocation2 + $0x384] sm:$0xf]  ;;  %853 = vmatpush.bf16.msra.mxu3 %v1535_v12  ;;  %v1247_v21 = vor.u32 %v1608_v18, %v1244_v19 }
  0x13   :  { %v1676_v15 = vld [vmem:[#allocation2 + $0x39c] sm:$0xf0]  ;;  %v1500_v22 = vld [vmem:[#allocation2 + $0x3a0] sm:$0xf0] }
  0x14   :  { %v1499_v17 = vor.u32 %v1676_v15, %v1498_v14  ;;  %v1210_v23 = vld [vmem:[#allocation2 + $0x140] sm:$0xf]  ;;  %v1503_v25 = vor.u32 %v1672_v20, %v1500_v22  ;;  %v1600_v28 = vld [vmem:[#allocation2 + $0x144] sm:$0xf]  ;;  %815 = vmatpush.bf16.msra.mxu0 %v1243_v16  ;;  %841 = vmatpush.bf16.msra.mxu2 %v1247_v21 }
  0x15   :  { %v1604_v24 = vld [vmem:[#allocation2 + $0x15c] sm:$0xf0]  ;;  %v1212_v30 = vld [vmem:[#allocation2 + $0x160] sm:$0xf0] }
  0x16   :  { %v1466_v26 = vld [vmem:[#allocation2 + $0x340] sm:$0xf]  ;;  %v1211_v29 = vor.u32 %v1604_v24, %v1210_v23  ;;  %v1664_v31 = vld [vmem:[#allocation2 + $0x344] sm:$0xf]  ;;  %828 = vmatpush.bf16.msra.mxu1 %v1499_v17  ;;  %v1215_v34 = vor.u32 %v1600_v28, %v1212_v30  ;;  %854 = vmatpush.bf16.msra.mxu3 %v1503_v25  ;;  %v1282_v28 = vld [vmem:[#allocation2 + $0x1c8] sm:$0xf] }
  0x17   :  { %v1668_v27 = vld [vmem:[#allocation2 + $0x35c] sm:$0xf0]  ;;  %v1468_v32 = vld [vmem:[#allocation2 + $0x360] sm:$0xf0]  ;;  %v1538_v30 = vld [vmem:[#allocation2 + $0x3c8] sm:$0xf] }
  0x18   :  { %v1467_v33 = vor.u32 %v1668_v27, %v1466_v26  ;;  %v1178_v35 = vld [vmem:[#allocation2 + $0x100] sm:$0xf]  ;;  %v1471_v38 = vor.u32 %v1664_v31, %v1468_v32  ;;  %v1592_v40 = vld [vmem:[#allocation2 + $0x104] sm:$0xf]  ;;  %816 = vmatpush.bf16.msra.mxu0 %v1211_v29  ;;  %842 = vmatpush.bf16.msra.mxu2 %v1215_v34  ;;  %v1621_v29 = vld [vmem:[#allocation2 + $0x1e4] sm:$0xf0] }
  0x19   :  { %v1596_v36 = vld [vmem:[#allocation2 + $0x11c] sm:$0xf0]  ;;  %v1180_v41 = vld [vmem:[#allocation2 + $0x120] sm:$0xf0]  ;;  %v1685_v32 = vld [vmem:[#allocation2 + $0x3e4] sm:$0xf0] }
  0x1a   :  { %v1434_v37 = vld [vmem:[#allocation2 + $0x300] sm:$0xf]  ;;  %v1656_v42 = vld [vmem:[#allocation2 + $0x304] sm:$0xf]  ;;  %v1179_v44 = vor.u32 %v1596_v36, %v1178_v35  ;;  %829 = vmatpush.bf16.msra.mxu1 %v1467_v33  ;;  %v1183_v46 = vor.u32 %v1592_v40, %v1180_v41  ;;  %855 = vmatpush.bf16.msra.mxu3 %v1471_v38  ;;  %v1617_v33 = vld [vmem:[#allocation2 + $0x1cc] sm:$0xf]  ;;  %v1283_v40 = vor.u32 %v1621_v29, %v1282_v28 }
  0x1b   :  { %v1660_v39 = vld [vmem:[#allocation2 + $0x31c] sm:$0xf0]  ;;  %v1436_v43 = vld [vmem:[#allocation2 + $0x320] sm:$0xf0]  ;;  %v1284_v34 = vld [vmem:[#allocation2 + $0x1e8] sm:$0xf0]  ;;  %v1539_v41 = vor.u32 %v1685_v32, %v1538_v30 }
  0x1c   :  { %v1435_v45 = vor.u32 %v1660_v39, %v1434_v37  ;;  %v1146_v47 = vld [vmem:[#allocation2 + $0xc0] sm:$0xf]  ;;  %v1439_v50 = vor.u32 %v1656_v42, %v1436_v43  ;;  %v1584_v52 = vld [vmem:[#allocation2 + $0xc4] sm:$0xf]  ;;  %817 = vmatpush.bf16.msra.mxu0 %v1179_v44  ;;  %843 = vmatpush.bf16.msra.mxu2 %v1183_v46  ;;  %v1681_v37 = vld [vmem:[#allocation2 + $0x3cc] sm:$0xf]  ;;  %v1287_v42 = vor.u32 %v1617_v33, %v1284_v34 }
  0x1d   :  { %v1588_v48 = vld [vmem:[#allocation2 + $0xdc] sm:$0xf0]  ;;  %v1148_v53 = vld [vmem:[#allocation2 + $0xe0] sm:$0xf0]  ;;  %v1540_v38 = vld [vmem:[#allocation2 + $0x3e8] sm:$0xf0] }
  0x1e   :  { %v1402_v49 = vld [vmem:[#allocation2 + $0x2c0] sm:$0xf]  ;;  %v1648_v54 = vld [vmem:[#allocation2 + $0x2c4] sm:$0xf]  ;;  %v1147_v56 = vor.u32 %v1588_v48, %v1146_v47  ;;  %830 = vmatpush.bf16.msra.mxu1 %v1435_v45  ;;  %v1151_v58 = vor.u32 %v1584_v52, %v1148_v53  ;;  %856 = vmatpush.bf16.msra.mxu3 %v1439_v50  ;;  %v1250_v43 = vld [vmem:[#allocation2 + $0x188] sm:$0xf]  ;;  %v1543_v46 = vor.u32 %v1681_v37, %v1540_v38 }
  0x1f   :  { %v1652_v51 = vld [vmem:[#allocation2 + $0x2dc] sm:$0xf0]  ;;  %v1404_v55 = vld [vmem:[#allocation2 + $0x2e0] sm:$0xf0]  ;;  %v1613_v44 = vld [vmem:[#allocation2 + $0x1a4] sm:$0xf0] }
  0x20   :  { %v1403_v57 = vor.u32 %v1652_v51, %v1402_v49  ;;  %v1114_v59 = vld [vmem:[#allocation2 + $0x80] sm:$0xf]  ;;  %v1407_v62 = vor.u32 %v1648_v54, %v1404_v55  ;;  %v1576_v0 = vld [vmem:[#allocation2 + $0x84] sm:$0xf]  ;;  %818 = vmatpush.bf16.msra.mxu0 %v1147_v56  ;;  %844 = vmatpush.bf16.msra.mxu2 %v1151_v58  ;;  %v1506_v45 = vld [vmem:[#allocation2 + $0x388] sm:$0xf]  ;;  %v1251_v52 = vor.u32 %v1613_v44, %v1250_v43 }
  0x21   :  { %v1580_v60 = vld [vmem:[#allocation2 + $0x9c] sm:$0xf0]  ;;  %v1116_v1 = vld [vmem:[#allocation2 + $0xa0] sm:$0xf0]  ;;  %v1677_v47 = vld [vmem:[#allocation2 + $0x3a4] sm:$0xf0] }
  0x22   :  { %v1370_v61 = vld [vmem:[#allocation2 + $0x280] sm:$0xf]  ;;  %v1640_v2 = vld [vmem:[#allocation2 + $0x284] sm:$0xf]  ;;  %v1115_v4 = vor.u32 %v1580_v60, %v1114_v59  ;;  %831 = vmatpush.bf16.msra.mxu1 %v1403_v57  ;;  %v1119_v6 = vor.u32 %v1576_v0, %v1116_v1  ;;  %857 = vmatpush.bf16.msra.mxu3 %v1407_v62  ;;  %v1609_v48 = vld [vmem:[#allocation2 + $0x18c] sm:$0xf]  ;;  %v1507_v54 = vor.u32 %v1677_v47, %v1506_v45 }
  0x23   :  { %v1644_v63 = vld [vmem:[#allocation2 + $0x29c] sm:$0xf0]  ;;  %v1372_v3 = vld [vmem:[#allocation2 + $0x2a0] sm:$0xf0]  ;;  %v1252_v49 = vld [vmem:[#allocation2 + $0x1a8] sm:$0xf0] }
  0x24   :  { %v1371_v5 = vor.u32 %v1644_v63, %v1370_v61  ;;  %v1082_v7 = vld [vmem:[#allocation2 + $0x40] sm:$0xf]  ;;  %v1375_v10 = vor.u32 %v1640_v2, %v1372_v3  ;;  %v1568_v12 = vld [vmem:[#allocation2 + $0x44] sm:$0xf]  ;;  %819 = vmatpush.bf16.msra.mxu0 %v1115_v4  ;;  %845 = vmatpush.bf16.msra.mxu2 %v1119_v6  ;;  %v1673_v50 = vld [vmem:[#allocation2 + $0x38c] sm:$0xf]  ;;  %v1255_v55 = vor.u32 %v1609_v48, %v1252_v49 }
  0x25   :  { %v1572_v8 = vld [vmem:[#allocation2 + $0x5c] sm:$0xf0]  ;;  %v1084_v13 = vld [vmem:[#allocation2 + $0x60] sm:$0xf0]  ;;  %v1508_v51 = vld [vmem:[#allocation2 + $0x3a8] sm:$0xf0] }
  0x26   :  { %v1338_v9 = vld [vmem:[#allocation2 + $0x240] sm:$0xf]  ;;  %v1632_v14 = vld [vmem:[#allocation2 + $0x244] sm:$0xf]  ;;  %v1083_v16 = vor.u32 %v1572_v8, %v1082_v7  ;;  %832 = vmatpush.bf16.msra.mxu1 %v1371_v5  ;;  %v1087_v20 = vor.u32 %v1568_v12, %v1084_v13  ;;  %858 = vmatpush.bf16.msra.mxu3 %v1375_v10  ;;  %v1218_v53 = vld [vmem:[#allocation2 + $0x148] sm:$0xf]  ;;  %v1511_v59 = vor.u32 %v1673_v50, %v1508_v51 }
  0x27   :  { %v1636_v11 = vld [vmem:[#allocation2 + $0x25c] sm:$0xf0]  ;;  %v1340_v15 = vld [vmem:[#allocation2 + $0x260] sm:$0xf0]  ;;  %v1605_v56 = vld [vmem:[#allocation2 + $0x164] sm:$0xf0] }
  0x28   :  { %v1050_v17 = vld [vmem:[#allocation2] sm:$0xf]  ;;  %v1339_v19 = vor.u32 %v1636_v11, %v1338_v9  ;;  %v1560_v23 = vld [vmem:[#allocation2 + $0x4] sm:$0xf]  ;;  %v1343_v24 = vor.u32 %v1632_v14, %v1340_v15  ;;  %820 = vmatpush.bf16.msra.mxu0 %v1083_v16  ;;  %846 = vmatpush.bf16.msra.mxu2 %v1087_v20  ;;  %v1474_v57 = vld [vmem:[#allocation2 + $0x348] sm:$0xf]  ;;  %v1219_v0 = vor.u32 %v1605_v56, %v1218_v53 }
  0x29   :  { %v1564_v18 = vld [vmem:[#allocation2 + $0x1c] sm:$0xf0]  ;;  %v1052_v25 = vld [vmem:[#allocation2 + $0x20] sm:$0xf0]  ;;  %v1669_v58 = vld [vmem:[#allocation2 + $0x364] sm:$0xf0] }
  0x2a   :  { %v1306_v21 = vld [vmem:[#allocation2 + $0x200] sm:$0xf]  ;;  %v1624_v26 = vld [vmem:[#allocation2 + $0x204] sm:$0xf]  ;;  %v1051_v31 = vor.u32 %v1564_v18, %v1050_v17  ;;  %833 = vmatpush.bf16.msra.mxu1 %v1339_v19  ;;  %v1055_v36 = vor.u32 %v1560_v23, %v1052_v25  ;;  %859 = vmatpush.bf16.msra.mxu3 %v1343_v24  ;;  %v1601_v60 = vld [vmem:[#allocation2 + $0x14c] sm:$0xf]  ;;  %v1475_v1 = vor.u32 %v1669_v58, %v1474_v57 }
  0x2b   :  { %v1628_v22 = vld [vmem:[#allocation2 + $0x21c] sm:$0xf0]  ;;  %v1308_v27 = vld [vmem:[#allocation2 + $0x220] sm:$0xf0]  ;;  %v1220_v61 = vld [vmem:[#allocation2 + $0x168] sm:$0xf0] }
  0x2c   :  { %v1307_v35 = vor.u32 %v1628_v22, %v1306_v21  ;;  %v1311_v39 = vor.u32 %v1624_v26, %v1308_v27  ;;  %821 = vmatpush.bf16.msra.mxu0 %v1051_v31  ;;  %847 = vmatpush.bf16.msra.mxu2 %v1055_v36  ;;  %v1665_v62 = vld [vmem:[#allocation2 + $0x34c] sm:$0xf]  ;;  %v42_v2 = vld [vmem:[#allocation5] sm:$0xff]  ;;  %v1223_v4 = vor.u32 %v1601_v60, %v1220_v61  ;;  %v1186_v5 = vld [vmem:[#allocation2 + $0x108] sm:$0xf] }
  0x2d   :  { %v1476_v63 = vld [vmem:[#allocation2 + $0x368] sm:$0xf0]  ;;  %v1597_v6 = vld [vmem:[#allocation2 + $0x124] sm:$0xf0]  ;;  %v1797_v8 = vpack.c.bf16 %v42_v2, %v42_v2  ;;  %v1546_v2 = vld [vmem:[#allocation2 + $0x3d0] sm:$0xf] }
  0x2e   :  { %834 = vmatpush.bf16.msra.mxu1 %v1307_v35  ;;  %860 = vmatpush.bf16.msra.mxu3 %v1311_v39  ;;  %v43_v3 = vld [vmem:[#allocation5 + $0x8] sm:$0xff]  ;;  %v1479_v10 = vor.u32 %v1665_v62, %v1476_v63  ;;  %v1187_v16 = vor.u32 %v1597_v6, %v1186_v5  ;;  %v1618_v5 = vld [vmem:[#allocation2 + $0x1d4] sm:$0xf] }
  0x2f   :  { %v1442_v7 = vld [vmem:[#allocation2 + $0x308] sm:$0xf]  ;;  %v1799_v9 = vpack.c.bf16 %v43_v3, %v43_v3  ;;  %v1593_v12 = vld [vmem:[#allocation2 + $0x10c] sm:$0xf]  ;;  %848 = vmatmul.bf16.vlgmr.msra.gmra.mxu2 %v1797_v8  ;;  %822 = vmatmul.bf16.vlgmr.msra.gmra.mxu0 %v1797_v8  ;;  %v1292_v6 = vld [vmem:[#allocation2 + $0x1f0] sm:$0xf0] }
  0x30   :  { %866 = vmatpush.bf16.msrb.mxu0 %v1283_v40  ;;  %892 = vmatpush.bf16.msrb.mxu2 %v1287_v42  ;;  %v1661_v11 = vld [vmem:[#allocation2 + $0x324] sm:$0xf0]  ;;  %v1188_v13 = vld [vmem:[#allocation2 + $0x128] sm:$0xf0] }
  0x31   :  { %v1657_v14 = vld [vmem:[#allocation2 + $0x30c] sm:$0xf]  ;;  %861 = vmatmul.bf16.vlgmr.msra.gmra.mxu3 %v1799_v9  ;;  %835 = vmatmul.bf16.vlgmr.msra.gmra.mxu1 %v1799_v9  ;;  %v1443_v17 = vor.u32 %v1661_v11, %v1442_v7  ;;  %v1191_v18 = vor.u32 %v1593_v12, %v1188_v13  ;;  %v1154_v19 = vld [vmem:[#allocation2 + $0xc8] sm:$0xf]  ;;  %v1682_v11 = vld [vmem:[#allocation2 + $0x3d4] sm:$0xf] }
  0x32   :  { %879 = vmatpush.bf16.msrb.mxu1 %v1539_v41  ;;  %905 = vmatpush.bf16.msrb.mxu3 %v1543_v46  ;;  %v1444_v15 = vld [vmem:[#allocation2 + $0x328] sm:$0xf0]  ;;  %v1589_v20 = vld [vmem:[#allocation2 + $0xe4] sm:$0xf0]  ;;  %v1548_v12 = vld [vmem:[#allocation2 + $0x3f0] sm:$0xf0] }
  0x33   :  { %v1410_v21 = vld [vmem:[#allocation2 + $0x2c8] sm:$0xf]  ;;  %v1447_v22 = vor.u32 %v1657_v14, %v1444_v15  ;;  %v1585_v24 = vld [vmem:[#allocation2 + $0xcc] sm:$0xf]  ;;  %v1155_v28 = vor.u32 %v1589_v20, %v1154_v19  ;;  %v1514_v19 = vld [vmem:[#allocation2 + $0x390] sm:$0xf]  ;;  %v1551_v20 = vor.u32 %v1682_v11, %v1548_v12 }
  0x34   :  { %867 = vmatpush.bf16.msrb.mxu0 %v1251_v52  ;;  %893 = vmatpush.bf16.msrb.mxu2 %v1255_v55  ;;  %v1653_v23 = vld [vmem:[#allocation2 + $0x2e4] sm:$0xf0]  ;;  %v1156_v25 = vld [vmem:[#allocation2 + $0xe8] sm:$0xf0]  ;;  %v1388_v11 = vld [vmem:[#allocation2 + $0x2b0] sm:$0xf0] }
  0x35   :  { %v1649_v26 = vld [vmem:[#allocation2 + $0x2cc] sm:$0xf]  ;;  %v1411_v29 = vor.u32 %v1653_v23, %v1410_v21  ;;  %v1159_v30 = vor.u32 %v1585_v24, %v1156_v25  ;;  %v1122_v31 = vld [vmem:[#allocation2 + $0x88] sm:$0xf]  ;;  %v1678_v21 = vld [vmem:[#allocation2 + $0x3ac] sm:$0xf0] }
  0x36   :  { %880 = vmatpush.bf16.msrb.mxu1 %v1507_v54  ;;  %906 = vmatpush.bf16.msrb.mxu3 %v1511_v59  ;;  %v1412_v27 = vld [vmem:[#allocation2 + $0x2e8] sm:$0xf0]  ;;  %v1581_v32 = vld [vmem:[#allocation2 + $0xa4] sm:$0xf0]  ;;  %v1260_v23 = vld [vmem:[#allocation2 + $0x1b0] sm:$0xf0] }
  0x37   :  { %v1378_v33 = vld [vmem:[#allocation2 + $0x288] sm:$0xf]  ;;  %v1415_v34 = vor.u32 %v1649_v26, %v1412_v27  ;;  %v1577_v36 = vld [vmem:[#allocation2 + $0x8c] sm:$0xf]  ;;  %v1123_v40 = vor.u32 %v1581_v32, %v1122_v31  ;;  %v1674_v24 = vld [vmem:[#allocation2 + $0x394] sm:$0xf]  ;;  %v1515_v27 = vor.u32 %v1678_v21, %v1514_v19 }
  0x38   :  { %868 = vmatpush.bf16.msrb.mxu0 %v1219_v0  ;;  %894 = vmatpush.bf16.msrb.mxu2 %v1223_v4  ;;  %v1645_v35 = vld [vmem:[#allocation2 + $0x2a4] sm:$0xf0]  ;;  %v1124_v37 = vld [vmem:[#allocation2 + $0xa8] sm:$0xf0]  ;;  %v1290_v0 = vld [vmem:[#allocation2 + $0x1d0] sm:$0xf] }
  0x39   :  { %v1641_v38 = vld [vmem:[#allocation2 + $0x28c] sm:$0xf]  ;;  %v1379_v41 = vor.u32 %v1645_v35, %v1378_v33  ;;  %v1127_v42 = vor.u32 %v1577_v36, %v1124_v37  ;;  %v1090_v43 = vld [vmem:[#allocation2 + $0x48] sm:$0xf]  ;;  %v1686_v4 = vld [vmem:[#allocation2 + $0x3ec] sm:$0xf0] }
  0x3a   :  { %881 = vmatpush.bf16.msrb.mxu1 %v1475_v1  ;;  %907 = vmatpush.bf16.msrb.mxu3 %v1479_v10  ;;  %v1380_v39 = vld [vmem:[#allocation2 + $0x2a8] sm:$0xf0]  ;;  %v1573_v44 = vld [vmem:[#allocation2 + $0x64] sm:$0xf0]  ;;  %v1622_v1 = vld [vmem:[#allocation2 + $0x1ec] sm:$0xf0]  ;;  %v1547_v15 = vor.u32 %v1686_v4, %v1546_v2 }
  0x3b   :  { %v1346_v45 = vld [vmem:[#allocation2 + $0x248] sm:$0xf]  ;;  %v1383_v46 = vor.u32 %v1641_v38, %v1380_v39  ;;  %v1569_v48 = vld [vmem:[#allocation2 + $0x4c] sm:$0xf]  ;;  %v1091_v52 = vor.u32 %v1573_v44, %v1090_v43  ;;  %v1291_v14 = vor.u32 %v1622_v1, %v1290_v0  ;;  %v1516_v25 = vld [vmem:[#allocation2 + $0x3b0] sm:$0xf0] }
  0x3c   :  { %869 = vmatpush.bf16.msrb.mxu0 %v1187_v16  ;;  %895 = vmatpush.bf16.msrb.mxu2 %v1191_v18  ;;  %v1637_v47 = vld [vmem:[#allocation2 + $0x264] sm:$0xf0]  ;;  %v1092_v49 = vld [vmem:[#allocation2 + $0x68] sm:$0xf0]  ;;  %v1295_v16 = vor.u32 %v1618_v5, %v1292_v6  ;;  %v1614_v18 = vld [vmem:[#allocation2 + $0x1ac] sm:$0xf0]  ;;  %v1519_v32 = vor.u32 %v1674_v24, %v1516_v25 }
  0x3d   :  { %v1633_v50 = vld [vmem:[#allocation2 + $0x24c] sm:$0xf]  ;;  %v1058_v53 = vld [vmem:[#allocation2 + $0x8] sm:$0xf]  ;;  %v1347_v55 = vor.u32 %v1637_v47, %v1346_v45  ;;  %v1095_v56 = vor.u32 %v1569_v48, %v1092_v49  ;;  %v1482_v31 = vld [vmem:[#allocation2 + $0x350] sm:$0xf] }
  0x3e   :  { %882 = vmatpush.bf16.msrb.mxu1 %v1443_v17  ;;  %908 = vmatpush.bf16.msrb.mxu3 %v1447_v22  ;;  %v1348_v51 = vld [vmem:[#allocation2 + $0x268] sm:$0xf0]  ;;  %v1565_v54 = vld [vmem:[#allocation2 + $0x24] sm:$0xf0]  ;;  %v1258_v17 = vld [vmem:[#allocation2 + $0x190] sm:$0xf] }
  0x3f   :  { %v1314_v57 = vld [vmem:[#allocation2 + $0x208] sm:$0xf]  ;;  %v1561_v59 = vld [vmem:[#allocation2 + $0xc] sm:$0xf]  ;;  %v1351_v60 = vor.u32 %v1633_v50, %v1348_v51  ;;  %v1059_v3 = vor.u32 %v1565_v54, %v1058_v53  ;;  %v1610_v22 = vld [vmem:[#allocation2 + $0x194] sm:$0xf]  ;;  %v1259_v26 = vor.u32 %v1614_v18, %v1258_v17 }
  0x40   :  { %870 = vmatpush.bf16.msrb.mxu0 %v1155_v28  ;;  %896 = vmatpush.bf16.msrb.mxu2 %v1159_v30  ;;  %v1629_v58 = vld [vmem:[#allocation2 + $0x224] sm:$0xf0]  ;;  %v1060_v61 = vld [vmem:[#allocation2 + $0x28] sm:$0xf0]  ;;  %v1263_v28 = vor.u32 %v1610_v22, %v1260_v23  ;;  %v1606_v30 = vld [vmem:[#allocation2 + $0x16c] sm:$0xf0] }
  0x41   :  { %v1625_v62 = vld [vmem:[#allocation2 + $0x20c] sm:$0xf]  ;;  %v1315_v7 = vor.u32 %v1629_v58, %v1314_v57  ;;  %v1063_v10 = vor.u32 %v1561_v59, %v1060_v61  ;;  %v1670_v33 = vld [vmem:[#allocation2 + $0x36c] sm:$0xf0]  ;;  %v1228_v35 = vld [vmem:[#allocation2 + $0x170] sm:$0xf0] }
  0x42   :  { %883 = vmatpush.bf16.msrb.mxu1 %v1411_v29  ;;  %909 = vmatpush.bf16.msrb.mxu3 %v1415_v34  ;;  %v1316_v63 = vld [vmem:[#allocation2 + $0x228] sm:$0xf0]  ;;  %v1226_v29 = vld [vmem:[#allocation2 + $0x150] sm:$0xf]  ;;  %v1602_v34 = vld [vmem:[#allocation2 + $0x154] sm:$0xf]  ;;  %v1483_v39 = vor.u32 %v1670_v33, %v1482_v31 }
  0x43   :  { %v1319_v13 = vor.u32 %v1625_v62, %v1316_v63  ;;  %v1666_v36 = vld [vmem:[#allocation2 + $0x354] sm:$0xf]  ;;  %v1227_v38 = vor.u32 %v1606_v30, %v1226_v29  ;;  %v1450_v43 = vld [vmem:[#allocation2 + $0x310] sm:$0xf] }
  0x44   :  { %871 = vmatpush.bf16.msrb.mxu0 %v1123_v40  ;;  %897 = vmatpush.bf16.msrb.mxu2 %v1127_v42  ;;  %v1484_v37 = vld [vmem:[#allocation2 + $0x370] sm:$0xf0]  ;;  %v1231_v40 = vor.u32 %v1602_v34, %v1228_v35  ;;  %v1598_v42 = vld [vmem:[#allocation2 + $0x12c] sm:$0xf0] }
  0x45   :  { %v1487_v44 = vor.u32 %v1666_v36, %v1484_v37  ;;  %v1662_v45 = vld [vmem:[#allocation2 + $0x32c] sm:$0xf0]  ;;  %v1196_v47 = vld [vmem:[#allocation2 + $0x130] sm:$0xf0]  ;;  %v1298_v36 = vld [vmem:[#allocation2 + $0x1d8] sm:$0xf] }
  0x46   :  { %884 = vmatpush.bf16.msrb.mxu1 %v1379_v41  ;;  %910 = vmatpush.bf16.msrb.mxu3 %v1383_v46  ;;  %v1194_v41 = vld [vmem:[#allocation2 + $0x110] sm:$0xf]  ;;  %v1594_v46 = vld [vmem:[#allocation2 + $0x114] sm:$0xf]  ;;  %v1451_v51 = vor.u32 %v1662_v45, %v1450_v43  ;;  %v1623_v37 = vld [vmem:[#allocation2 + $0x1f4] sm:$0xf0] }
  0x47   :  { %v1658_v48 = vld [vmem:[#allocation2 + $0x314] sm:$0xf]  ;;  %v1195_v50 = vor.u32 %v1598_v42, %v1194_v41  ;;  %v1162_v53 = vld [vmem:[#allocation2 + $0xd0] sm:$0xf]  ;;  %v1619_v41 = vld [vmem:[#allocation2 + $0x1dc] sm:$0xf] }
  0x48   :  { %872 = vmatpush.bf16.msrb.mxu0 %v1091_v52  ;;  %898 = vmatpush.bf16.msrb.mxu2 %v1095_v56  ;;  %v1452_v49 = vld [vmem:[#allocation2 + $0x330] sm:$0xf0]  ;;  %v1199_v52 = vor.u32 %v1594_v46, %v1196_v47  ;;  %v1590_v54 = vld [vmem:[#allocation2 + $0xec] sm:$0xf0]  ;;  %v1300_v42 = vld [vmem:[#allocation2 + $0x1f8] sm:$0xf0] }
  0x49   :  { %v1455_v56 = vor.u32 %v1658_v48, %v1452_v49  ;;  %v1654_v57 = vld [vmem:[#allocation2 + $0x2ec] sm:$0xf0]  ;;  %v1586_v58 = vld [vmem:[#allocation2 + $0xd4] sm:$0xf]  ;;  %v1163_v62 = vor.u32 %v1590_v54, %v1162_v53  ;;  %v1683_v45 = vld [vmem:[#allocation2 + $0x3dc] sm:$0xf]  ;;  %v1299_v48 = vor.u32 %v1623_v37, %v1298_v36 }
  0x4a   :  { %885 = vmatpush.bf16.msrb.mxu1 %v1347_v55  ;;  %911 = vmatpush.bf16.msrb.mxu3 %v1351_v60  ;;  %v1418_v55 = vld [vmem:[#allocation2 + $0x2d0] sm:$0xf]  ;;  %v1164_v59 = vld [vmem:[#allocation2 + $0xf0] sm:$0xf0]  ;;  %v1556_v46 = vld [vmem:[#allocation2 + $0x3f8] sm:$0xf0] }
  0x4b   :  { %v1650_v60 = vld [vmem:[#allocation2 + $0x2d4] sm:$0xf]  ;;  %v1419_v63 = vor.u32 %v1654_v57, %v1418_v55  ;;  %v1167_v0 = vor.u32 %v1586_v58, %v1164_v59  ;;  %v1130_v1 = vld [vmem:[#allocation2 + $0x90] sm:$0xf]  ;;  %v1522_v53 = vld [vmem:[#allocation2 + $0x398] sm:$0xf]  ;;  %v1559_v54 = vor.u32 %v1683_v45, %v1556_v46 }
  0x4c   :  { %873 = vmatpush.bf16.msrb.mxu0 %v1059_v3  ;;  %899 = vmatpush.bf16.msrb.mxu2 %v1063_v10  ;;  %v1420_v61 = vld [vmem:[#allocation2 + $0x2f0] sm:$0xf0]  ;;  %v1582_v2 = vld [vmem:[#allocation2 + $0xac] sm:$0xf0]  ;;  %v1679_v55 = vld [vmem:[#allocation2 + $0x3b4] sm:$0xf0] }
  0x4d   :  { %v1386_v3 = vld [vmem:[#allocation2 + $0x290] sm:$0xf]  ;;  %v1423_v4 = vor.u32 %v1650_v60, %v1420_v61  ;;  %v1578_v6 = vld [vmem:[#allocation2 + $0x94] sm:$0xf]  ;;  %v1131_v12 = vor.u32 %v1582_v2, %v1130_v1  ;;  %v1268_v57 = vld [vmem:[#allocation2 + $0x1b8] sm:$0xf0]  ;;  %v1523_v61 = vor.u32 %v1679_v55, %v1522_v53 }
  0x4e   :  { %886 = vmatpush.bf16.msrb.mxu1 %v1315_v7  ;;  %912 = vmatpush.bf16.msrb.mxu3 %v1319_v13  ;;  %v1646_v5 = vld [vmem:[#allocation2 + $0x2ac] sm:$0xf0]  ;;  %v1132_v7 = vld [vmem:[#allocation2 + $0xb0] sm:$0xf0]  ;;  %v1675_v58 = vld [vmem:[#allocation2 + $0x39c] sm:$0xf] }
  0x4f   :  { %900 = vmatmul.bf16.vlgmr.msrb.gmra.mxu2 %v1797_v8  ;;  %874 = vmatmul.bf16.vlgmr.msrb.gmra.mxu0 %v1797_v8  ;;  %v1642_v10 = vld [vmem:[#allocation2 + $0x294] sm:$0xf]  ;;  %v1387_v13 = vor.u32 %v1646_v5, %v1386_v3  ;;  %v1354_v17 = vld [vmem:[#allocation2 + $0x250] sm:$0xf]  ;;  %v1524_v59 = vld [vmem:[#allocation2 + $0x3b8] sm:$0xf0] }
  0x50   :  { %918 = vmatpush.bf16.msra.mxu0 %v1291_v14  ;;  %944 = vmatpush.bf16.msra.mxu2 %v1295_v16  ;;  %v1135_v14 = vor.u32 %v1578_v6, %v1132_v7  ;;  %v1574_v16 = vld [vmem:[#allocation2 + $0x6c] sm:$0xf0]  ;;  %v1391_v18 = vor.u32 %v1642_v10, %v1388_v11  ;;  %v1100_v21 = vld [vmem:[#allocation2 + $0x70] sm:$0xf0]  ;;  %v1490_v1 = vld [vmem:[#allocation2 + $0x358] sm:$0xf]  ;;  %v1527_v2 = vor.u32 %v1675_v58, %v1524_v59 }
  0x51   :  { %913 = vmatmul.bf16.vlgmr.msrb.gmra.mxu3 %v1799_v9  ;;  %887 = vmatmul.bf16.vlgmr.msrb.gmra.mxu1 %v1799_v9  ;;  %v1638_v19 = vld [vmem:[#allocation2 + $0x26c] sm:$0xf0]  ;;  %v1634_v22 = vld [vmem:[#allocation2 + $0x254] sm:$0xf]  ;;  %v1671_v3 = vld [vmem:[#allocation2 + $0x374] sm:$0xf0] }
  0x52   :  { %931 = vmatpush.bf16.msra.mxu1 %v1547_v15  ;;  %957 = vmatpush.bf16.msra.mxu3 %v1551_v20  ;;  %v1098_v15 = vld [vmem:[#allocation2 + $0x50] sm:$0xf]  ;;  %v1570_v20 = vld [vmem:[#allocation2 + $0x54] sm:$0xf]  ;;  %v1236_v5 = vld [vmem:[#allocation2 + $0x178] sm:$0xf0]  ;;  %v1491_v11 = vor.u32 %v1671_v3, %v1490_v1 }
  0x53   :  { %v1356_v23 = vld [vmem:[#allocation2 + $0x270] sm:$0xf0]  ;;  %v1099_v24 = vor.u32 %v1574_v16, %v1098_v15  ;;  %v1066_v25 = vld [vmem:[#allocation2 + $0x10] sm:$0xf]  ;;  %v1667_v6 = vld [vmem:[#allocation2 + $0x35c] sm:$0xf] }
  0x54   :  { %919 = vmatpush.bf16.msra.mxu0 %v1259_v26  ;;  %945 = vmatpush.bf16.msra.mxu2 %v1263_v28  ;;  %v1566_v26 = vld [vmem:[#allocation2 + $0x2c] sm:$0xf0]  ;;  %v1103_v28 = vor.u32 %v1570_v20, %v1100_v21  ;;  %v1562_v31 = vld [vmem:[#allocation2 + $0x14] sm:$0xf]  ;;  %v1492_v7 = vld [vmem:[#allocation2 + $0x378] sm:$0xf0] }
  0x55   :  { %v1322_v29 = vld [vmem:[#allocation2 + $0x210] sm:$0xf]  ;;  %v1068_v33 = vld [vmem:[#allocation2 + $0x30] sm:$0xf0]  ;;  %v1458_v15 = vld [vmem:[#allocation2 + $0x318] sm:$0xf]  ;;  %v1495_v16 = vor.u32 %v1667_v6, %v1492_v7 }
  0x56   :  { %932 = vmatpush.bf16.msra.mxu1 %v1515_v27  ;;  %958 = vmatpush.bf16.msra.mxu3 %v1519_v32  ;;  %v1355_v27 = vor.u32 %v1638_v19, %v1354_v17  ;;  %v1630_v30 = vld [vmem:[#allocation2 + $0x22c] sm:$0xf0]  ;;  %v1359_v32 = vor.u32 %v1634_v22, %v1356_v23  ;;  %v1626_v34 = vld [vmem:[#allocation2 + $0x214] sm:$0xf]  ;;  %v1663_v17 = vld [vmem:[#allocation2 + $0x334] sm:$0xf0] }
  0x57   :  { %v1324_v35 = vld [vmem:[#allocation2 + $0x230] sm:$0xf0]  ;;  %v1323_v43 = vor.u32 %v1630_v30, %v1322_v29  ;;  %v1204_v19 = vld [vmem:[#allocation2 + $0x138] sm:$0xf0]  ;;  %v1459_v23 = vor.u32 %v1663_v17, %v1458_v15  ;;  %v1655_v29 = vld [vmem:[#allocation2 + $0x2f4] sm:$0xf0] }
  0x58   :  { %920 = vmatpush.bf16.msra.mxu0 %v1227_v38  ;;  %946 = vmatpush.bf16.msra.mxu2 %v1231_v40  ;;  %v1554_v38 = vld [vmem:[#allocation2 + $0x3d8] sm:$0xf]  ;;  %v1327_v47 = vor.u32 %v1626_v34, %v1324_v35  ;;  %v1659_v20 = vld [vmem:[#allocation2 + $0x31c] sm:$0xf] }
  0x59   :  { %v1687_v40 = vld [vmem:[#allocation2 + $0x3f4] sm:$0xf0]  ;;  %v1460_v21 = vld [vmem:[#allocation2 + $0x338] sm:$0xf0] }
  0x5a   :  { %933 = vmatpush.bf16.msra.mxu1 %v1483_v39  ;;  %959 = vmatpush.bf16.msra.mxu3 %v1487_v44  ;;  %v1067_v39 = vor.u32 %v1566_v26, %v1066_v25  ;;  %v1071_v44 = vor.u32 %v1562_v31, %v1068_v33  ;;  %v1555_v49 = vor.u32 %v1687_v40, %v1554_v38  ;;  %v1170_v25 = vld [vmem:[#allocation2 + $0xd8] sm:$0xf]  ;;  %v1587_v30 = vld [vmem:[#allocation2 + $0xdc] sm:$0xf] }
  0x5b   :  { %v1591_v26 = vld [vmem:[#allocation2 + $0xf4] sm:$0xf0]  ;;  %v1172_v31 = vld [vmem:[#allocation2 + $0xf8] sm:$0xf0] }
  0x5c   :  { %921 = vmatpush.bf16.msra.mxu0 %v1195_v50  ;;  %947 = vmatpush.bf16.msra.mxu2 %v1199_v52  ;;  %v1303_v50 = vor.u32 %v1619_v41, %v1300_v42  ;;  %v1615_v52 = vld [vmem:[#allocation2 + $0x1b4] sm:$0xf0]  ;;  %v1428_v33 = vld [vmem:[#allocation2 + $0x2f8] sm:$0xf0]  ;;  %v1171_v34 = vor.u32 %v1591_v26, %v1170_v25  ;;  %v1175_v36 = vor.u32 %v1587_v30, %v1172_v31 }
  0x5d   :  { %v1138_v37 = vld [vmem:[#allocation2 + $0x98] sm:$0xf]  ;;  %v1579_v42 = vld [vmem:[#allocation2 + $0x9c] sm:$0xf] }
  0x5e   :  { %934 = vmatpush.bf16.msra.mxu1 %v1451_v51  ;;  %960 = vmatpush.bf16.msra.mxu3 %v1455_v56  ;;  %v1266_v51 = vld [vmem:[#allocation2 + $0x198] sm:$0xf]  ;;  %v1611_v56 = vld [vmem:[#allocation2 + $0x19c] sm:$0xf] }
  0x5f   :  { %v1267_v60 = vor.u32 %v1615_v52, %v1266_v51  ;;  %v1583_v38 = vld [vmem:[#allocation2 + $0xb4] sm:$0xf0]  ;;  %v1396_v45 = vld [vmem:[#allocation2 + $0x2b8] sm:$0xf0] }
  0x60   :  { %922 = vmatpush.bf16.msra.mxu0 %v1163_v62  ;;  %948 = vmatpush.bf16.msra.mxu2 %v1167_v0  ;;  %v1271_v62 = vor.u32 %v1611_v56, %v1268_v57  ;;  %v1607_v0 = vld [vmem:[#allocation2 + $0x174] sm:$0xf0]  ;;  %v1139_v46 = vor.u32 %v1583_v38, %v1138_v37  ;;  %v1108_v55 = vld [vmem:[#allocation2 + $0x78] sm:$0xf0] }
  0x61   :  { %v1647_v41 = vld [vmem:[#allocation2 + $0x2b4] sm:$0xf0]  ;;  %v1635_v56 = vld [vmem:[#allocation2 + $0x25c] sm:$0xf] }
  0x62   :  { %935 = vmatpush.bf16.msra.mxu1 %v1419_v63  ;;  %961 = vmatpush.bf16.msra.mxu3 %v1423_v4  ;;  %v1234_v63 = vld [vmem:[#allocation2 + $0x158] sm:$0xf]  ;;  %v1603_v4 = vld [vmem:[#allocation2 + $0x15c] sm:$0xf] }
  0x63   :  { %v1235_v10 = vor.u32 %v1607_v0, %v1234_v63  ;;  %v1362_v51 = vld [vmem:[#allocation2 + $0x258] sm:$0xf]  ;;  %v1364_v57 = vld [vmem:[#allocation2 + $0x278] sm:$0xf0] }
  0x64   :  { %923 = vmatpush.bf16.msra.mxu0 %v1131_v12  ;;  %949 = vmatpush.bf16.msra.mxu2 %v1135_v14  ;;  %v1239_v12 = vor.u32 %v1603_v4, %v1236_v5  ;;  %v1599_v14 = vld [vmem:[#allocation2 + $0x134] sm:$0xf0]  ;;  %v1367_v0 = vor.u32 %v1635_v56, %v1364_v57  ;;  %v1076_v3 = vld [vmem:[#allocation2 + $0x38] sm:$0xf0] }
  0x65   :  { %v1639_v53 = vld [vmem:[#allocation2 + $0x274] sm:$0xf0]  ;;  %v1627_v4 = vld [vmem:[#allocation2 + $0x21c] sm:$0xf] }
  0x66   :  { %936 = vmatpush.bf16.msra.mxu1 %v1387_v13  ;;  %962 = vmatpush.bf16.msra.mxu3 %v1391_v18  ;;  %v1202_v13 = vld [vmem:[#allocation2 + $0x118] sm:$0xf]  ;;  %v1595_v18 = vld [vmem:[#allocation2 + $0x11c] sm:$0xf]  ;;  %v1363_v59 = vor.u32 %v1639_v53, %v1362_v51 }
  0x67   :  { %v1203_v22 = vor.u32 %v1599_v14, %v1202_v13  ;;  %v1330_v63 = vld [vmem:[#allocation2 + $0x218] sm:$0xf]  ;;  %v1332_v5 = vld [vmem:[#allocation2 + $0x238] sm:$0xf0] }
  0x68   :  { %924 = vmatpush.bf16.msra.mxu0 %v1099_v24  ;;  %950 = vmatpush.bf16.msra.mxu2 %v1103_v28  ;;  %v1207_v24 = vor.u32 %v1595_v18, %v1204_v19  ;;  %v1463_v28 = vor.u32 %v1659_v20, %v1460_v21  ;;  %v1631_v1 = vld [vmem:[#allocation2 + $0x234] sm:$0xf0] }
  0x69   :  { %v1331_v7 = vor.u32 %v1631_v1, %v1330_v63 }
  0x6a   :  { %937 = vmatpush.bf16.msra.mxu1 %v1355_v27  ;;  %963 = vmatpush.bf16.msra.mxu3 %v1359_v32  ;;  %v1426_v27 = vld [vmem:[#allocation2 + $0x2d8] sm:$0xf]  ;;  %v1651_v32 = vld [vmem:[#allocation2 + $0x2dc] sm:$0xf] }
  0x6b   :  { %v1427_v35 = vor.u32 %v1655_v29, %v1426_v27  ;;  %v1431_v40 = vor.u32 %v1651_v32, %v1428_v33 }
  0x6c   :  { %925 = vmatpush.bf16.msra.mxu0 %v1067_v39  ;;  %951 = vmatpush.bf16.msra.mxu2 %v1071_v44  ;;  %v1394_v39 = vld [vmem:[#allocation2 + $0x298] sm:$0xf]  ;;  %v1643_v44 = vld [vmem:[#allocation2 + $0x29c] sm:$0xf] }
  0x6d   :  { %v1399_v52 = vor.u32 %v1643_v44, %v1396_v45 }
  0x6e   :  { %938 = vmatpush.bf16.msra.mxu1 %v1323_v43  ;;  %964 = vmatpush.bf16.msra.mxu3 %v1327_v47  ;;  %v1140_v43 = vld [vmem:[#allocation2 + $0xb8] sm:$0xf0]  ;;  %v1395_v47 = vor.u32 %v1647_v41, %v1394_v39 }
  0x6f   :  { %952 = vmatmul.bf16.vlgmr.msra.gmra.mxu2 %v1797_v8  ;;  %926 = vmatmul.bf16.vlgmr.msra.gmra.mxu0 %v1797_v8 }
  0x70   :  { %970 = vmatpush.bf16.msrb.mxu0 %v1299_v48  ;;  %996 = vmatpush.bf16.msrb.mxu2 %v1303_v50  ;;  %v1143_v48 = vor.u32 %v1579_v42, %v1140_v43  ;;  %v1575_v50 = vld [vmem:[#allocation2 + $0x74] sm:$0xf0] }
  0x71   :  { %965 = vmatmul.bf16.vlgmr.msra.gmra.mxu3 %v1799_v9  ;;  %939 = vmatmul.bf16.vlgmr.msra.gmra.mxu1 %v1799_v9 }
  0x72   :  { %983 = vmatpush.bf16.msrb.mxu1 %v1555_v49  ;;  %1009 = vmatpush.bf16.msrb.mxu3 %v1559_v54  ;;  %v1106_v49 = vld [vmem:[#allocation2 + $0x58] sm:$0xf]  ;;  %v1571_v54 = vld [vmem:[#allocation2 + $0x5c] sm:$0xf] }
  0x73   :  { %v1107_v58 = vor.u32 %v1575_v50, %v1106_v49 }
  0x74   :  { %971 = vmatpush.bf16.msrb.mxu0 %v1267_v60  ;;  %997 = vmatpush.bf16.msrb.mxu2 %v1271_v62  ;;  %v1111_v60 = vor.u32 %v1571_v54, %v1108_v55  ;;  %v1567_v62 = vld [vmem:[#allocation2 + $0x34] sm:$0xf0] }
  0x76   :  { %984 = vmatpush.bf16.msrb.mxu1 %v1523_v61  ;;  %1010 = vmatpush.bf16.msrb.mxu3 %v1527_v2  ;;  %v1074_v61 = vld [vmem:[#allocation2 + $0x18] sm:$0xf]  ;;  %v1563_v2 = vld [vmem:[#allocation2 + $0x1c] sm:$0xf] }
  0x77   :  { %v1075_v6 = vor.u32 %v1567_v62, %v1074_v61 }
  0x78   :  { %972 = vmatpush.bf16.msrb.mxu0 %v1235_v10  ;;  %998 = vmatpush.bf16.msrb.mxu2 %v1239_v12  ;;  %v1079_v10 = vor.u32 %v1563_v2, %v1076_v3 }
  0x7a   :  { %985 = vmatpush.bf16.msrb.mxu1 %v1491_v11  ;;  %1011 = vmatpush.bf16.msrb.mxu3 %v1495_v16  ;;  %v1335_v11 = vor.u32 %v1627_v4, %v1332_v5 }
  0x7c   :  { %973 = vmatpush.bf16.msrb.mxu0 %v1203_v22  ;;  %999 = vmatpush.bf16.msrb.mxu2 %v1207_v24 }
  0x7e   :  { %986 = vmatpush.bf16.msrb.mxu1 %v1459_v23  ;;  %1012 = vmatpush.bf16.msrb.mxu3 %v1463_v28 }
  0x80   :  { %974 = vmatpush.bf16.msrb.mxu0 %v1171_v34  ;;  %1000 = vmatpush.bf16.msrb.mxu2 %v1175_v36 }
  0x82   :  { %987 = vmatpush.bf16.msrb.mxu1 %v1427_v35  ;;  %1013 = vmatpush.bf16.msrb.mxu3 %v1431_v40 }
  0x84   :  { %975 = vmatpush.bf16.msrb.mxu0 %v1139_v46  ;;  %1001 = vmatpush.bf16.msrb.mxu2 %v1143_v48 }
  0x86   :  { %988 = vmatpush.bf16.msrb.mxu1 %v1395_v47  ;;  %1014 = vmatpush.bf16.msrb.mxu3 %v1399_v52 }
  0x88   :  { %976 = vmatpush.bf16.msrb.mxu0 %v1107_v58  ;;  %1002 = vmatpush.bf16.msrb.mxu2 %v1111_v60 }
  0x8a   :  { %989 = vmatpush.bf16.msrb.mxu1 %v1363_v59  ;;  %1015 = vmatpush.bf16.msrb.mxu3 %v1367_v0 }
  0x8c   :  { %977 = vmatpush.bf16.msrb.mxu0 %v1075_v6  ;;  %1003 = vmatpush.bf16.msrb.mxu2 %v1079_v10 }
  0x8e   :  { %990 = vmatpush.bf16.msrb.mxu1 %v1331_v7  ;;  %1016 = vmatpush.bf16.msrb.mxu3 %v1335_v11 }
  0x8f   :  { %978 = vmatmul.bf16.vlgmr.msrb.gmra.mxu0 %v1797_v8  ;;  %1004 = vmatmul.bf16.vlgmr.msrb.gmra.mxu2 %v1797_v8 }
  0x91   :  { %991 = vmatmul.bf16.vlgmr.msrb.gmra.mxu1 %v1799_v9  ;;  %1017 = vmatmul.bf16.vlgmr.msrb.gmra.mxu3 %v1799_v9 }
  0xac   :  { %v823_v13 = vpop.f32.mrf.mxu0 }
  0xae   :  { %v836_v12 = vpop.f32.mrf.mxu1 }
  0xaf   :  { %v837_v14 = vadd.f32 %v836_v12, %v823_v13 }
  0xb1   :  { %1022 = vst [vmem:[#allocation7] sm:$0xff] %v837_v14 }
  0xb2   :  { %v849_v15 = vpop.f32.mrf.mxu2 }
  0xb4   :  { %v862_v16 = vpop.f32.mrf.mxu3  ;;  %v825_v19 = vpop.f32.mrf.mxu0 }
  0xb5   :  { %v863_v17 = vadd.f32 %v862_v16, %v849_v15 }
  0xb6   :  { %v838_v18 = vpop.f32.mrf.mxu1 }
  0xb7   :  { %1023 = vst [vmem:[#allocation7 + $0x8] sm:$0xff] %v863_v17 }
  0xba   :  { %v851_v20 = vpop.f32.mrf.mxu2 }
  0xbc   :  { %v864_v21 = vpop.f32.mrf.mxu3 }
  0xcc   :  { %v875_v22 = vpop.f32.mrf.mxu0 }
  0xce   :  { %v888_v23 = vpop.f32.mrf.mxu1 }
  0xcf   :  { %v889_v24 = vadd.f32 %v888_v23, %v875_v22 }
  0xd1   :  { %1024 = vst [vmem:[#allocation7 + $0x10] sm:$0xff] %v889_v24 }
  0xd2   :  { %v901_v25 = vpop.f32.mrf.mxu2 }
  0xd4   :  { %v914_v8 = vpop.f32.mrf.mxu3  ;;  %v877_v9 = vpop.f32.mrf.mxu0 }
  0xd5   :  { %v915_v26 = vadd.f32 %v914_v8, %v901_v25 }
  0xd6   :  { %v890_v27 = vpop.f32.mrf.mxu1 }
  0xd7   :  { %1025 = vst [vmem:[#allocation7 + $0x18] sm:$0xff] %v915_v26 }
  0xda   :  { %v903_v28 = vpop.f32.mrf.mxu2 }
  0xdc   :  { %v916_v29 = vpop.f32.mrf.mxu3 }
  0xec   :  { %v927_v30 = vpop.f32.mrf.mxu0 }
  0xee   :  { %v940_v31 = vpop.f32.mrf.mxu1 }
  0xef   :  { %v941_v32 = vadd.f32 %v940_v31, %v927_v30 }
  0xf1   :  { %1026 = vst [vmem:[#allocation7 + $0x20] sm:$0xff] %v941_v32 }
  0xf2   :  { %v953_v33 = vpop.f32.mrf.mxu2 }
  0xf4   :  { %v966_v34 = vpop.f32.mrf.mxu3  ;;  %v929_v36 = vpop.f32.mrf.mxu0 }
  0xf5   :  { %v967_v35 = vadd.f32 %v966_v34, %v953_v33 }
  0xf6   :  { %v942_v37 = vpop.f32.mrf.mxu1 }
  0xf7   :  { %1027 = vst [vmem:[#allocation7 + $0x28] sm:$0xff] %v967_v35 }
  0xfa   :  { %v955_v38 = vpop.f32.mrf.mxu2 }
  0xfc   :  { %v968_v39 = vpop.f32.mrf.mxu3 }
 0x10c   :  { %v979_v40 = vpop.f32.mrf.mxu0 }
 0x10e   :  { %v992_v41 = vpop.f32.mrf.mxu1 }
 0x10f   :  { %v993_v42 = vadd.f32 %v992_v41, %v979_v40 }
 0x111   :  { %1028 = vst [vmem:[#allocation7 + $0x30] sm:$0xff] %v993_v42 }
 0x112   :  { %v1005_v43 = vpop.f32.mrf.mxu2 }
 0x114   :  { %v1018_v44 = vpop.f32.mrf.mxu3  ;;  %v981_v45 = vpop.f32.mrf.mxu0 }
 0x115   :  { %v1019_v46 = vadd.f32 %v1018_v44, %v1005_v43 }
 0x116   :  { %v994_v47 = vpop.f32.mrf.mxu1 }
 0x117   :  { %1029 = vst [vmem:[#allocation7 + $0x38] sm:$0xff] %v1019_v46 }
 0x118   :  { %1040 = dma.vmem_to_hbm [thread:$0]  %s1036_s1, 1024, %s1038_s23, [#allocation4]  }
 0x11a   :  { %v1007_v48 = vpop.f32.mrf.mxu2 }
 0x11c   :  { %v1020_v49 = vpop.f32.mrf.mxu3 }
 0x11d   :  { %1769 = dma.done.wait [#allocation4], 1024  }
 0x11e   :  { %1770 = vsyncadd [#allocation4], 4294966272 }
 0x11f   :  { %1045 = vsyncpa [#allocation3], 1 }
 0x120   :  { %1046 = vsyncpa [#allocation6], 1 }
 0x121   :  { %1047 = vsyncpa [#allocation4], 1 }

// kernel: tpu_custom_call.1
= control target key start
LH: loop header
LB: loop body
LE: loop exit
PB: predicated region body
PF: predicated region fallthrough
CT: control target
= control target key end

     0   :  { %7 = vsyncpa [#allocation3], 0  ;;  %s1820_s0 = inlined_call_operand.hbm [shape: bf16[256,1024], index: 0, kind: input, shape index: {}]   ;;  %s1821_s1 = inlined_call_operand.hbm [shape: f32[8,256], index: 1, kind: input, shape index: {}]   ;;  %s1822_s2 = inlined_call_operand.hbm [shape: f32[8,1024], index: 2, kind: output, shape index: {}]  }
   0x1   :  { %8 = vsyncpa [#allocation6], 0 }
   0x2   :  { %9 = vsyncpa [#allocation4], 0  ;;  %s14_s11 = sshll.u32 %s1820_s0, 4  ;;  %s1771_s12 = smov [#allocation2]   ;;  %s15_s11 = int_to_ptr.hbm [resolvable:$true] %s14_s11 }
   0x3   :  { %s16_s13 = sshll.u32 %s1771_s12, 4  ;;  %s28_s16 = sshll.u32 %s1821_s1, 4  ;;  %s17_s13 = int_to_ptr.vmem [resolvable:$true] %s16_s13  ;;  %s29_s16 = int_to_ptr.hbm [resolvable:$true] %s28_s16 }
   0x4   :  { %s1772_s17 = smov 512   ;;  %s1773_s18 = smov 32  }
   0x5   :  { %22 = dma.hbm_to_vmem [thread:$0]  %s15_s11, 16384, %s17_s13, [#allocation3], %s1772_s17, %s1772_s17, %s1773_s18  }
   0x6   :  { %s1774_s19 = smov [#allocation5]  }
   0x7   :  { %s30_s20 = sshll.u32 %s1774_s19, 4  ;;  %s31_s20 = int_to_ptr.vmem [resolvable:$true] %s30_s20 }
   0x8   :  { %33 = dma.hbm_to_vmem [thread:$0]  %s29_s16, 256, %s31_s20, [#allocation6]  }
   0x9   :  { %1765 = dma.done.wait [#allocation3], 16384  }
   0xa   :  { %1766 = vsyncadd [#allocation3], 4294950912 }
   0xb   :  { %1767 = dma.done.wait [#allocation6], 256  }
   0xc   :  { %1768 = vsyncadd [#allocation6], 4294967040  ;;  %v1274_v0 = vld [vmem:[#allocation2 + $0x1c0] sm:$0xf]  ;;  %v1616_v5 = vld [vmem:[#allocation2 + $0x1c4] sm:$0xf] }
   0xd   :  { %v1620_v1 = vld [vmem:[#allocation2 + $0x1dc] sm:$0xf0]  ;;  %v1276_v6 = vld [vmem:[#allocation2 + $0x1e0] sm:$0xf0]  ;;  %s1775_s0 = smov [#allocation7]   ;;  %s1037_s23 = sshll.u32 %s1822_s2, 4  ;;  %s1038_s23 = int_to_ptr.hbm [resolvable:$true] %s1037_s23 }
   0xe   :  { %v1530_v2 = vld [vmem:[#allocation2 + $0x3c0] sm:$0xf]  ;;  %v1275_v3 = vor.u32 %v1620_v1, %v1274_v0  ;;  %v1279_v8 = vor.u32 %v1616_v5, %v1276_v6  ;;  %v1680_v9 = vld [vmem:[#allocation2 + $0x3c4] sm:$0xf]  ;;  %s1035_s1 = sshll.u32 %s1775_s0, 4  ;;  %s1036_s1 = int_to_ptr.vmem [resolvable:$true] %s1035_s1 }
   0xf   :  { %v1684_v4 = vld [vmem:[#allocation2 + $0x3dc] sm:$0xf0]  ;;  %v1532_v10 = vld [vmem:[#allocation2 + $0x3e0] sm:$0xf0] }
  0x10   :  { %v1531_v7 = vor.u32 %v1684_v4, %v1530_v2  ;;  %v1242_v11 = vld [vmem:[#allocation2 + $0x180] sm:$0xf]  ;;  %814 = vmatpush.bf16.msra.mxu0 %v1275_v3  ;;  %v1535_v12 = vor.u32 %v1680_v9, %v1532_v10  ;;  %840 = vmatpush.bf16.msra.mxu2 %v1279_v8  ;;  %v1608_v18 = vld [vmem:[#allocation2 + $0x184] sm:$0xf] }
  0x11   :  { %v1612_v13 = vld [vmem:[#allocation2 + $0x19c] sm:$0xf0]  ;;  %v1244_v19 = vld [vmem:[#allocation2 + $0x1a0] sm:$0xf0] }
  0x12   :  { %v1498_v14 = vld [vmem:[#allocation2 + $0x380] sm:$0xf]  ;;  %827 = vmatpush.bf16.msra.mxu1 %v1531_v7  ;;  %v1243_v16 = vor.u32 %v1612_v13, %v1242_v11  ;;  %v1672_v20 = vld [vmem:[#allocation2 + $0x384] sm:$0xf]  ;;  %853 = vmatpush.bf16.msra.mxu3 %v1535_v12  ;;  %v1247_v21 = vor.u32 %v1608_v18, %v1244_v19 }
  0x13   :  { %v1676_v15 = vld [vmem:[#allocation2 + $0x39c] sm:$0xf0]  ;;  %v1500_v22 = vld [vmem:[#allocation2 + $0x3a0] sm:$0xf0] }
  0x14   :  { %v1499_v17 = vor.u32 %v1676_v15, %v1498_v14  ;;  %v1210_v23 = vld [vmem:[#allocation2 + $0x140] sm:$0xf]  ;;  %v1503_v25 = vor.u32 %v1672_v20, %v1500_v22  ;;  %v1600_v28 = vld [vmem:[#allocation2 + $0x144] sm:$0xf]  ;;  %815 = vmatpush.bf16.msra.mxu0 %v1243_v16  ;;  %841 = vmatpush.bf16.msra.mxu2 %v1247_v21 }
  0x15   :  { %v1604_v24 = vld [vmem:[#allocation2 + $0x15c] sm:$0xf0]  ;;  %v1212_v30 = vld [vmem:[#allocation2 + $0x160] sm:$0xf0] }
  0x16   :  { %v1466_v26 = vld [vmem:[#allocation2 + $0x340] sm:$0xf]  ;;  %v1211_v29 = vor.u32 %v1604_v24, %v1210_v23  ;;  %v1664_v31 = vld [vmem:[#allocation2 + $0x344] sm:$0xf]  ;;  %828 = vmatpush.bf16.msra.mxu1 %v1499_v17  ;;  %v1215_v34 = vor.u32 %v1600_v28, %v1212_v30  ;;  %854 = vmatpush.bf16.msra.mxu3 %v1503_v25  ;;  %v1282_v28 = vld [vmem:[#allocation2 + $0x1c8] sm:$0xf] }
  0x17   :  { %v1668_v27 = vld [vmem:[#allocation2 + $0x35c] sm:$0xf0]  ;;  %v1468_v32 = vld [vmem:[#allocation2 + $0x360] sm:$0xf0]  ;;  %v1538_v30 = vld [vmem:[#allocation2 + $0x3c8] sm:$0xf] }
  0x18   :  { %v1467_v33 = vor.u32 %v1668_v27, %v1466_v26  ;;  %v1178_v35 = vld [vmem:[#allocation2 + $0x100] sm:$0xf]  ;;  %v1471_v38 = vor.u32 %v1664_v31, %v1468_v32  ;;  %v1592_v40 = vld [vmem:[#allocation2 + $0x104] sm:$0xf]  ;;  %816 = vmatpush.bf16.msra.mxu0 %v1211_v29  ;;  %842 = vmatpush.bf16.msra.mxu2 %v1215_v34  ;;  %v1621_v29 = vld [vmem:[#allocation2 + $0x1e4] sm:$0xf0] }
  0x19   :  { %v1596_v36 = vld [vmem:[#allocation2 + $0x11c] sm:$0xf0]  ;;  %v1180_v41 = vld [vmem:[#allocation2 + $0x120] sm:$0xf0]  ;;  %v1685_v32 = vld [vmem:[#allocation2 + $0x3e4] sm:$0xf0] }
  0x1a   :  { %v1434_v37 = vld [vmem:[#allocation2 + $0x300] sm:$0xf]  ;;  %v1656_v42 = vld [vmem:[#allocation2 + $0x304] sm:$0xf]  ;;  %v1179_v44 = vor.u32 %v1596_v36, %v1178_v35  ;;  %829 = vmatpush.bf16.msra.mxu1 %v1467_v33  ;;  %v1183_v46 = vor.u32 %v1592_v40, %v1180_v41  ;;  %855 = vmatpush.bf16.msra.mxu3 %v1471_v38  ;;  %v1617_v33 = vld [vmem:[#allocation2 + $0x1cc] sm:$0xf]  ;;  %v1283_v40 = vor.u32 %v1621_v29, %v1282_v28 }
  0x1b   :  { %v1660_v39 = vld [vmem:[#allocation2 + $0x31c] sm:$0xf0]  ;;  %v1436_v43 = vld [vmem:[#allocation2 + $0x320] sm:$0xf0]  ;;  %v1284_v34 = vld [vmem:[#allocation2 + $0x1e8] sm:$0xf0]  ;;  %v1539_v41 = vor.u32 %v1685_v32, %v1538_v30 }
  0x1c   :  { %v1435_v45 = vor.u32 %v1660_v39, %v1434_v37  ;;  %v1146_v47 = vld [vmem:[#allocation2 + $0xc0] sm:$0xf]  ;;  %v1439_v50 = vor.u32 %v1656_v42, %v1436_v43  ;;  %v1584_v52 = vld [vmem:[#allocation2 + $0xc4] sm:$0xf]  ;;  %817 = vmatpush.bf16.msra.mxu0 %v1179_v44  ;;  %843 = vmatpush.bf16.msra.mxu2 %v1183_v46  ;;  %v1681_v37 = vld [vmem:[#allocation2 + $0x3cc] sm:$0xf]  ;;  %v1287_v42 = vor.u32 %v1617_v33, %v1284_v34 }
  0x1d   :  { %v1588_v48 = vld [vmem:[#allocation2 + $0xdc] sm:$0xf0]  ;;  %v1148_v53 = vld [vmem:[#allocation2 + $0xe0] sm:$0xf0]  ;;  %v1540_v38 = vld [vmem:[#allocation2 + $0x3e8] sm:$0xf0] }
  0x1e   :  { %v1402_v49 = vld [vmem:[#allocation2 + $0x2c0] sm:$0xf]  ;;  %v1648_v54 = vld [vmem:[#allocation2 + $0x2c4] sm:$0xf]  ;;  %v1147_v56 = vor.u32 %v1588_v48, %v1146_v47  ;;  %830 = vmatpush.bf16.msra.mxu1 %v1435_v45  ;;  %v1151_v58 = vor.u32 %v1584_v52, %v1148_v53  ;;  %856 = vmatpush.bf16.msra.mxu3 %v1439_v50  ;;  %v1250_v43 = vld [vmem:[#allocation2 + $0x188] sm:$0xf]  ;;  %v1543_v46 = vor.u32 %v1681_v37, %v1540_v38 }
  0x1f   :  { %v1652_v51 = vld [vmem:[#allocation2 + $0x2dc] sm:$0xf0]  ;;  %v1404_v55 = vld [vmem:[#allocation2 + $0x2e0] sm:$0xf0]  ;;  %v1613_v44 = vld [vmem:[#allocation2 + $0x1a4] sm:$0xf0] }
  0x20   :  { %v1403_v57 = vor.u32 %v1652_v51, %v1402_v49  ;;  %v1114_v59 = vld [vmem:[#allocation2 + $0x80] sm:$0xf]  ;;  %v1407_v62 = vor.u32 %v1648_v54, %v1404_v55  ;;  %v1576_v0 = vld [vmem:[#allocation2 + $0x84] sm:$0xf]  ;;  %818 = vmatpush.bf16.msra.mxu0 %v1147_v56  ;;  %844 = vmatpush.bf16.msra.mxu2 %v1151_v58  ;;  %v1506_v45 = vld [vmem:[#allocation2 + $0x388] sm:$0xf]  ;;  %v1251_v52 = vor.u32 %v1613_v44, %v1250_v43 }
  0x21   :  { %v1580_v60 = vld [vmem:[#allocation2 + $0x9c] sm:$0xf0]  ;;  %v1116_v1 = vld [vmem:[#allocation2 + $0xa0] sm:$0xf0]  ;;  %v1677_v47 = vld [vmem:[#allocation2 + $0x3a4] sm:$0xf0] }
  0x22   :  { %v1370_v61 = vld [vmem:[#allocation2 + $0x280] sm:$0xf]  ;;  %v1640_v2 = vld [vmem:[#allocation2 + $0x284] sm:$0xf]  ;;  %v1115_v4 = vor.u32 %v1580_v60, %v1114_v59  ;;  %831 = vmatpush.bf16.msra.mxu1 %v1403_v57  ;;  %v1119_v6 = vor.u32 %v1576_v0, %v1116_v1  ;;  %857 = vmatpush.bf16.msra.mxu3 %v1407_v62  ;;  %v1609_v48 = vld [vmem:[#allocation2 + $0x18c] sm:$0xf]  ;;  %v1507_v54 = vor.u32 %v1677_v47, %v1506_v45 }
  0x23   :  { %v1644_v63 = vld [vmem:[#allocation2 + $0x29c] sm:$0xf0]  ;;  %v1372_v3 = vld [vmem:[#allocation2 + $0x2a0] sm:$0xf0]  ;;  %v1252_v49 = vld [vmem:[#allocation2 + $0x1a8] sm:$0xf0] }
  0x24   :  { %v1371_v5 = vor.u32 %v1644_v63, %v1370_v61  ;;  %v1082_v7 = vld [vmem:[#allocation2 + $0x40] sm:$0xf]  ;;  %v1375_v10 = vor.u32 %v1640_v2, %v1372_v3  ;;  %v1568_v12 = vld [vmem:[#allocation2 + $0x44] sm:$0xf]  ;;  %819 = vmatpush.bf16.msra.mxu0 %v1115_v4  ;;  %845 = vmatpush.bf16.msra.mxu2 %v1119_v6  ;;  %v1673_v50 = vld [vmem:[#allocation2 + $0x38c] sm:$0xf]  ;;  %v1255_v55 = vor.u32 %v1609_v48, %v1252_v49 }
  0x25   :  { %v1572_v8 = vld [vmem:[#allocation2 + $0x5c] sm:$0xf0]  ;;  %v1084_v13 = vld [vmem:[#allocation2 + $0x60] sm:$0xf0]  ;;  %v1508_v51 = vld [vmem:[#allocation2 + $0x3a8] sm:$0xf0] }
  0x26   :  { %v1338_v9 = vld [vmem:[#allocation2 + $0x240] sm:$0xf]  ;;  %v1632_v14 = vld [vmem:[#allocation2 + $0x244] sm:$0xf]  ;;  %v1083_v16 = vor.u32 %v1572_v8, %v1082_v7  ;;  %832 = vmatpush.bf16.msra.mxu1 %v1371_v5  ;;  %v1087_v20 = vor.u32 %v1568_v12, %v1084_v13  ;;  %858 = vmatpush.bf16.msra.mxu3 %v1375_v10  ;;  %v1218_v53 = vld [vmem:[#allocation2 + $0x148] sm:$0xf]  ;;  %v1511_v59 = vor.u32 %v1673_v50, %v1508_v51 }
  0x27   :  { %v1636_v11 = vld [vmem:[#allocation2 + $0x25c] sm:$0xf0]  ;;  %v1340_v15 = vld [vmem:[#allocation2 + $0x260] sm:$0xf0]  ;;  %v1605_v56 = vld [vmem:[#allocation2 + $0x164] sm:$0xf0] }
  0x28   :  { %v1050_v17 = vld [vmem:[#allocation2] sm:$0xf]  ;;  %v1339_v19 = vor.u32 %v1636_v11, %v1338_v9  ;;  %v1560_v23 = vld [vmem:[#allocation2 + $0x4] sm:$0xf]  ;;  %v1343_v24 = vor.u32 %v1632_v14, %v1340_v15  ;;  %820 = vmatpush.bf16.msra.mxu0 %v1083_v16  ;;  %846 = vmatpush.bf16.msra.mxu2 %v1087_v20  ;;  %v1474_v57 = vld [vmem:[#allocation2 + $0x348] sm:$0xf]  ;;  %v1219_v0 = vor.u32 %v1605_v56, %v1218_v53 }
  0x29   :  { %v1564_v18 = vld [vmem:[#allocation2 + $0x1c] sm:$0xf0]  ;;  %v1052_v25 = vld [vmem:[#allocation2 + $0x20] sm:$0xf0]  ;;  %v1669_v58 = vld [vmem:[#allocation2 + $0x364] sm:$0xf0] }
  0x2a   :  { %v1306_v21 = vld [vmem:[#allocation2 + $0x200] sm:$0xf]  ;;  %v1624_v26 = vld [vmem:[#allocation2 + $0x204] sm:$0xf]  ;;  %v1051_v31 = vor.u32 %v1564_v18, %v1050_v17  ;;  %833 = vmatpush.bf16.msra.mxu1 %v1339_v19  ;;  %v1055_v36 = vor.u32 %v1560_v23, %v1052_v25  ;;  %859 = vmatpush.bf16.msra.mxu3 %v1343_v24  ;;  %v1601_v60 = vld [vmem:[#allocation2 + $0x14c] sm:$0xf]  ;;  %v1475_v1 = vor.u32 %v1669_v58, %v1474_v57 }
  0x2b   :  { %v1628_v22 = vld [vmem:[#allocation2 + $0x21c] sm:$0xf0]  ;;  %v1308_v27 = vld [vmem:[#allocation2 + $0x220] sm:$0xf0]  ;;  %v1220_v61 = vld [vmem:[#allocation2 + $0x168] sm:$0xf0] }
  0x2c   :  { %v1307_v35 = vor.u32 %v1628_v22, %v1306_v21  ;;  %v1311_v39 = vor.u32 %v1624_v26, %v1308_v27  ;;  %821 = vmatpush.bf16.msra.mxu0 %v1051_v31  ;;  %847 = vmatpush.bf16.msra.mxu2 %v1055_v36  ;;  %v1665_v62 = vld [vmem:[#allocation2 + $0x34c] sm:$0xf]  ;;  %v42_v2 = vld [vmem:[#allocation5] sm:$0xff]  ;;  %v1223_v4 = vor.u32 %v1601_v60, %v1220_v61  ;;  %v1186_v5 = vld [vmem:[#allocation2 + $0x108] sm:$0xf] }
  0x2d   :  { %v1476_v63 = vld [vmem:[#allocation2 + $0x368] sm:$0xf0]  ;;  %v1597_v6 = vld [vmem:[#allocation2 + $0x124] sm:$0xf0]  ;;  %v1797_v8 = vpack.c.bf16 %v42_v2, %v42_v2  ;;  %v1546_v2 = vld [vmem:[#allocation2 + $0x3d0] sm:$0xf] }
  0x2e   :  { %834 = vmatpush.bf16.msra.mxu1 %v1307_v35  ;;  %860 = vmatpush.bf16.msra.mxu3 %v1311_v39  ;;  %v43_v3 = vld [vmem:[#allocation5 + $0x8] sm:$0xff]  ;;  %v1479_v10 = vor.u32 %v1665_v62, %v1476_v63  ;;  %v1187_v16 = vor.u32 %v1597_v6, %v1186_v5  ;;  %v1618_v5 = vld [vmem:[#allocation2 + $0x1d4] sm:$0xf] }
  0x2f   :  { %v1442_v7 = vld [vmem:[#allocation2 + $0x308] sm:$0xf]  ;;  %v1799_v9 = vpack.c.bf16 %v43_v3, %v43_v3  ;;  %v1593_v12 = vld [vmem:[#allocation2 + $0x10c] sm:$0xf]  ;;  %848 = vmatmul.bf16.vlgmr.msra.gmra.mxu2 %v1797_v8  ;;  %822 = vmatmul.bf16.vlgmr.msra.gmra.mxu0 %v1797_v8  ;;  %v1292_v6 = vld [vmem:[#allocation2 + $0x1f0] sm:$0xf0] }
  0x30   :  { %866 = vmatpush.bf16.msrb.mxu0 %v1283_v40  ;;  %892 = vmatpush.bf16.msrb.mxu2 %v1287_v42  ;;  %v1661_v11 = vld [vmem:[#allocation2 + $0x324] sm:$0xf0]  ;;  %v1188_v13 = vld [vmem:[#allocation2 + $0x128] sm:$0xf0] }
  0x31   :  { %v1657_v14 = vld [vmem:[#allocation2 + $0x30c] sm:$0xf]  ;;  %861 = vmatmul.bf16.vlgmr.msra.gmra.mxu3 %v1799_v9  ;;  %835 = vmatmul.bf16.vlgmr.msra.gmra.mxu1 %v1799_v9  ;;  %v1443_v17 = vor.u32 %v1661_v11, %v1442_v7  ;;  %v1191_v18 = vor.u32 %v1593_v12, %v1188_v13  ;;  %v1154_v19 = vld [vmem:[#allocation2 + $0xc8] sm:$0xf]  ;;  %v1682_v11 = vld [vmem:[#allocation2 + $0x3d4] sm:$0xf] }
  0x32   :  { %879 = vmatpush.bf16.msrb.mxu1 %v1539_v41  ;;  %905 = vmatpush.bf16.msrb.mxu3 %v1543_v46  ;;  %v1444_v15 = vld [vmem:[#allocation2 + $0x328] sm:$0xf0]  ;;  %v1589_v20 = vld [vmem:[#allocation2 + $0xe4] sm:$0xf0]  ;;  %v1548_v12 = vld [vmem:[#allocation2 + $0x3f0] sm:$0xf0] }
  0x33   :  { %v1410_v21 = vld [vmem:[#allocation2 + $0x2c8] sm:$0xf]  ;;  %v1447_v22 = vor.u32 %v1657_v14, %v1444_v15  ;;  %v1585_v24 = vld [vmem:[#allocation2 + $0xcc] sm:$0xf]  ;;  %v1155_v28 = vor.u32 %v1589_v20, %v1154_v19  ;;  %v1514_v19 = vld [vmem:[#allocation2 + $0x390] sm:$0xf]  ;;  %v1551_v20 = vor.u32 %v1682_v11, %v1548_v12 }
  0x34   :  { %867 = vmatpush.bf16.msrb.mxu0 %v1251_v52  ;;  %893 = vmatpush.bf16.msrb.mxu2 %v1255_v55  ;;  %v1653_v23 = vld [vmem:[#allocation2 + $0x2e4] sm:$0xf0]  ;;  %v1156_v25 = vld [vmem:[#allocation2 + $0xe8] sm:$0xf0]  ;;  %v1388_v11 = vld [vmem:[#allocation2 + $0x2b0] sm:$0xf0] }
  0x35   :  { %v1649_v26 = vld [vmem:[#allocation2 + $0x2cc] sm:$0xf]  ;;  %v1411_v29 = vor.u32 %v1653_v23, %v1410_v21  ;;  %v1159_v30 = vor.u32 %v1585_v24, %v1156_v25  ;;  %v1122_v31 = vld [vmem:[#allocation2 + $0x88] sm:$0xf]  ;;  %v1678_v21 = vld [vmem:[#allocation2 + $0x3ac] sm:$0xf0] }
  0x36   :  { %880 = vmatpush.bf16.msrb.mxu1 %v1507_v54  ;;  %906 = vmatpush.bf16.msrb.mxu3 %v1511_v59  ;;  %v1412_v27 = vld [vmem:[#allocation2 + $0x2e8] sm:$0xf0]  ;;  %v1581_v32 = vld [vmem:[#allocation2 + $0xa4] sm:$0xf0]  ;;  %v1260_v23 = vld [vmem:[#allocation2 + $0x1b0] sm:$0xf0] }
  0x37   :  { %v1378_v33 = vld [vmem:[#allocation2 + $0x288] sm:$0xf]  ;;  %v1415_v34 = vor.u32 %v1649_v26, %v1412_v27  ;;  %v1577_v36 = vld [vmem:[#allocation2 + $0x8c] sm:$0xf]  ;;  %v1123_v40 = vor.u32 %v1581_v32, %v1122_v31  ;;  %v1674_v24 = vld [vmem:[#allocation2 + $0x394] sm:$0xf]  ;;  %v1515_v27 = vor.u32 %v1678_v21, %v1514_v19 }
  0x38   :  { %868 = vmatpush.bf16.msrb.mxu0 %v1219_v0  ;;  %894 = vmatpush.bf16.msrb.mxu2 %v1223_v4  ;;  %v1645_v35 = vld [vmem:[#allocation2 + $0x2a4] sm:$0xf0]  ;;  %v1124_v37 = vld [vmem:[#allocation2 + $0xa8] sm:$0xf0]  ;;  %v1290_v0 = vld [vmem:[#allocation2 + $0x1d0] sm:$0xf] }
  0x39   :  { %v1641_v38 = vld [vmem:[#allocation2 + $0x28c] sm:$0xf]  ;;  %v1379_v41 = vor.u32 %v1645_v35, %v1378_v33  ;;  %v1127_v42 = vor.u32 %v1577_v36, %v1124_v37  ;;  %v1090_v43 = vld [vmem:[#allocation2 + $0x48] sm:$0xf]  ;;  %v1686_v4 = vld [vmem:[#allocation2 + $0x3ec] sm:$0xf0] }
  0x3a   :  { %881 = vmatpush.bf16.msrb.mxu1 %v1475_v1  ;;  %907 = vmatpush.bf16.msrb.mxu3 %v1479_v10  ;;  %v1380_v39 = vld [vmem:[#allocation2 + $0x2a8] sm:$0xf0]  ;;  %v1573_v44 = vld [vmem:[#allocation2 + $0x64] sm:$0xf0]  ;;  %v1622_v1 = vld [vmem:[#allocation2 + $0x1ec] sm:$0xf0]  ;;  %v1547_v15 = vor.u32 %v1686_v4, %v1546_v2 }
  0x3b   :  { %v1346_v45 = vld [vmem:[#allocation2 + $0x248] sm:$0xf]  ;;  %v1383_v46 = vor.u32 %v1641_v38, %v1380_v39  ;;  %v1569_v48 = vld [vmem:[#allocation2 + $0x4c] sm:$0xf]  ;;  %v1091_v52 = vor.u32 %v1573_v44, %v1090_v43  ;;  %v1291_v14 = vor.u32 %v1622_v1, %v1290_v0  ;;  %v1516_v25 = vld [vmem:[#allocation2 + $0x3b0] sm:$0xf0] }
  0x3c   :  { %869 = vmatpush.bf16.msrb.mxu0 %v1187_v16  ;;  %895 = vmatpush.bf16.msrb.mxu2 %v1191_v18  ;;  %v1637_v47 = vld [vmem:[#allocation2 + $0x264] sm:$0xf0]  ;;  %v1092_v49 = vld [vmem:[#allocation2 + $0x68] sm:$0xf0]  ;;  %v1295_v16 = vor.u32 %v1618_v5, %v1292_v6  ;;  %v1614_v18 = vld [vmem:[#allocation2 + $0x1ac] sm:$0xf0]  ;;  %v1519_v32 = vor.u32 %v1674_v24, %v1516_v25 }
  0x3d   :  { %v1633_v50 = vld [vmem:[#allocation2 + $0x24c] sm:$0xf]  ;;  %v1058_v53 = vld [vmem:[#allocation2 + $0x8] sm:$0xf]  ;;  %v1347_v55 = vor.u32 %v1637_v47, %v1346_v45  ;;  %v1095_v56 = vor.u32 %v1569_v48, %v1092_v49  ;;  %v1482_v31 = vld [vmem:[#allocation2 + $0x350] sm:$0xf] }
  0x3e   :  { %882 = vmatpush.bf16.msrb.mxu1 %v1443_v17  ;;  %908 = vmatpush.bf16.msrb.mxu3 %v1447_v22  ;;  %v1348_v51 = vld [vmem:[#allocation2 + $0x268] sm:$0xf0]  ;;  %v1565_v54 = vld [vmem:[#allocation2 + $0x24] sm:$0xf0]  ;;  %v1258_v17 = vld [vmem:[#allocation2 + $0x190] sm:$0xf] }
  0x3f   :  { %v1314_v57 = vld [vmem:[#allocation2 + $0x208] sm:$0xf]  ;;  %v1561_v59 = vld [vmem:[#allocation2 + $0xc] sm:$0xf]  ;;  %v1351_v60 = vor.u32 %v1633_v50, %v1348_v51  ;;  %v1059_v3 = vor.u32 %v1565_v54, %v1058_v53  ;;  %v1610_v22 = vld [vmem:[#allocation2 + $0x194] sm:$0xf]  ;;  %v1259_v26 = vor.u32 %v1614_v18, %v1258_v17 }
  0x40   :  { %870 = vmatpush.bf16.msrb.mxu0 %v1155_v28  ;;  %896 = vmatpush.bf16.msrb.mxu2 %v1159_v30  ;;  %v1629_v58 = vld [vmem:[#allocation2 + $0x224] sm:$0xf0]  ;;  %v1060_v61 = vld [vmem:[#allocation2 + $0x28] sm:$0xf0]  ;;  %v1263_v28 = vor.u32 %v1610_v22, %v1260_v23  ;;  %v1606_v30 = vld [vmem:[#allocation2 + $0x16c] sm:$0xf0] }
  0x41   :  { %v1625_v62 = vld [vmem:[#allocation2 + $0x20c] sm:$0xf]  ;;  %v1315_v7 = vor.u32 %v1629_v58, %v1314_v57  ;;  %v1063_v10 = vor.u32 %v1561_v59, %v1060_v61  ;;  %v1670_v33 = vld [vmem:[#allocation2 + $0x36c] sm:$0xf0]  ;;  %v1228_v35 = vld [vmem:[#allocation2 + $0x170] sm:$0xf0] }
  0x42   :  { %883 = vmatpush.bf16.msrb.mxu1 %v1411_v29  ;;  %909 = vmatpush.bf16.msrb.mxu3 %v1415_v34  ;;  %v1316_v63 = vld [vmem:[#allocation2 + $0x228] sm:$0xf0]  ;;  %v1226_v29 = vld [vmem:[#allocation2 + $0x150] sm:$0xf]  ;;  %v1602_v34 = vld [vmem:[#allocation2 + $0x154] sm:$0xf]  ;;  %v1483_v39 = vor.u32 %v1670_v33, %v1482_v31 }
  0x43   :  { %v1319_v13 = vor.u32 %v1625_v62, %v1316_v63  ;;  %v1666_v36 = vld [vmem:[#allocation2 + $0x354] sm:$0xf]  ;;  %v1227_v38 = vor.u32 %v1606_v30, %v1226_v29  ;;  %v1450_v43 = vld [vmem:[#allocation2 + $0x310] sm:$0xf] }
  0x44   :  { %871 = vmatpush.bf16.msrb.mxu0 %v1123_v40  ;;  %897 = vmatpush.bf16.msrb.mxu2 %v1127_v42  ;;  %v1484_v37 = vld [vmem:[#allocation2 + $0x370] sm:$0xf0]  ;;  %v1231_v40 = vor.u32 %v1602_v34, %v1228_v35  ;;  %v1598_v42 = vld [vmem:[#allocation2 + $0x12c] sm:$0xf0] }
  0x45   :  { %v1487_v44 = vor.u32 %v1666_v36, %v1484_v37  ;;  %v1662_v45 = vld [vmem:[#allocation2 + $0x32c] sm:$0xf0]  ;;  %v1196_v47 = vld [vmem:[#allocation2 + $0x130] sm:$0xf0]  ;;  %v1298_v36 = vld [vmem:[#allocation2 + $0x1d8] sm:$0xf] }
  0x46   :  { %884 = vmatpush.bf16.msrb.mxu1 %v1379_v41  ;;  %910 = vmatpush.bf16.msrb.mxu3 %v1383_v46  ;;  %v1194_v41 = vld [vmem:[#allocation2 + $0x110] sm:$0xf]  ;;  %v1594_v46 = vld [vmem:[#allocation2 + $0x114] sm:$0xf]  ;;  %v1451_v51 = vor.u32 %v1662_v45, %v1450_v43  ;;  %v1623_v37 = vld [vmem:[#allocation2 + $0x1f4] sm:$0xf0] }
  0x47   :  { %v1658_v48 = vld [vmem:[#allocation2 + $0x314] sm:$0xf]  ;;  %v1195_v50 = vor.u32 %v1598_v42, %v1194_v41  ;;  %v1162_v53 = vld [vmem:[#allocation2 + $0xd0] sm:$0xf]  ;;  %v1619_v41 = vld [vmem:[#allocation2 + $0x1dc] sm:$0xf] }
  0x48   :  { %872 = vmatpush.bf16.msrb.mxu0 %v1091_v52  ;;  %898 = vmatpush.bf16.msrb.mxu2 %v1095_v56  ;;  %v1452_v49 = vld [vmem:[#allocation2 + $0x330] sm:$0xf0]  ;;  %v1199_v52 = vor.u32 %v1594_v46, %v1196_v47  ;;  %v1590_v54 = vld [vmem:[#allocation2 + $0xec] sm:$0xf0]  ;;  %v1300_v42 = vld [vmem:[#allocation2 + $0x1f8] sm:$0xf0] }
  0x49   :  { %v1455_v56 = vor.u32 %v1658_v48, %v1452_v49  ;;  %v1654_v57 = vld [vmem:[#allocation2 + $0x2ec] sm:$0xf0]  ;;  %v1586_v58 = vld [vmem:[#allocation2 + $0xd4] sm:$0xf]  ;;  %v1163_v62 = vor.u32 %v1590_v54, %v1162_v53  ;;  %v1683_v45 = vld [vmem:[#allocation2 + $0x3dc] sm:$0xf]  ;;  %v1299_v48 = vor.u32 %v1623_v37, %v1298_v36 }
  0x4a   :  { %885 = vmatpush.bf16.msrb.mxu1 %v1347_v55  ;;  %911 = vmatpush.bf16.msrb.mxu3 %v1351_v60  ;;  %v1418_v55 = vld [vmem:[#allocation2 + $0x2d0] sm:$0xf]  ;;  %v1164_v59 = vld [vmem:[#allocation2 + $0xf0] sm:$0xf0]  ;;  %v1556_v46 = vld [vmem:[#allocation2 + $0x3f8] sm:$0xf0] }
  0x4b   :  { %v1650_v60 = vld [vmem:[#allocation2 + $0x2d4] sm:$0xf]  ;;  %v1419_v63 = vor.u32 %v1654_v57, %v1418_v55  ;;  %v1167_v0 = vor.u32 %v1586_v58, %v1164_v59  ;;  %v1130_v1 = vld [vmem:[#allocation2 + $0x90] sm:$0xf]  ;;  %v1522_v53 = vld [vmem:[#allocation2 + $0x398] sm:$0xf]  ;;  %v1559_v54 = vor.u32 %v1683_v45, %v1556_v46 }
  0x4c   :  { %873 = vmatpush.bf16.msrb.mxu0 %v1059_v3  ;;  %899 = vmatpush.bf16.msrb.mxu2 %v1063_v10  ;;  %v1420_v61 = vld [vmem:[#allocation2 + $0x2f0] sm:$0xf0]  ;;  %v1582_v2 = vld [vmem:[#allocation2 + $0xac] sm:$0xf0]  ;;  %v1679_v55 = vld [vmem:[#allocation2 + $0x3b4] sm:$0xf0] }
  0x4d   :  { %v1386_v3 = vld [vmem:[#allocation2 + $0x290] sm:$0xf]  ;;  %v1423_v4 = vor.u32 %v1650_v60, %v1420_v61  ;;  %v1578_v6 = vld [vmem:[#allocation2 + $0x94] sm:$0xf]  ;;  %v1131_v12 = vor.u32 %v1582_v2, %v1130_v1  ;;  %v1268_v57 = vld [vmem:[#allocation2 + $0x1b8] sm:$0xf0]  ;;  %v1523_v61 = vor.u32 %v1679_v55, %v1522_v53 }
  0x4e   :  { %886 = vmatpush.bf16.msrb.mxu1 %v1315_v7  ;;  %912 = vmatpush.bf16.msrb.mxu3 %v1319_v13  ;;  %v1646_v5 = vld [vmem:[#allocation2 + $0x2ac] sm:$0xf0]  ;;  %v1132_v7 = vld [vmem:[#allocation2 + $0xb0] sm:$0xf0]  ;;  %v1675_v58 = vld [vmem:[#allocation2 + $0x39c] sm:$0xf] }
  0x4f   :  { %900 = vmatmul.bf16.vlgmr.msrb.gmra.mxu2 %v1797_v8  ;;  %874 = vmatmul.bf16.vlgmr.msrb.gmra.mxu0 %v1797_v8  ;;  %v1642_v10 = vld [vmem:[#allocation2 + $0x294] sm:$0xf]  ;;  %v1387_v13 = vor.u32 %v1646_v5, %v1386_v3  ;;  %v1354_v17 = vld [vmem:[#allocation2 + $0x250] sm:$0xf]  ;;  %v1524_v59 = vld [vmem:[#allocation2 + $0x3b8] sm:$0xf0] }
  0x50   :  { %918 = vmatpush.bf16.msra.mxu0 %v1291_v14  ;;  %944 = vmatpush.bf16.msra.mxu2 %v1295_v16  ;;  %v1135_v14 = vor.u32 %v1578_v6, %v1132_v7  ;;  %v1574_v16 = vld [vmem:[#allocation2 + $0x6c] sm:$0xf0]  ;;  %v1391_v18 = vor.u32 %v1642_v10, %v1388_v11  ;;  %v1100_v21 = vld [vmem:[#allocation2 + $0x70] sm:$0xf0]  ;;  %v1490_v1 = vld [vmem:[#allocation2 + $0x358] sm:$0xf]  ;;  %v1527_v2 = vor.u32 %v1675_v58, %v1524_v59 }
  0x51   :  { %913 = vmatmul.bf16.vlgmr.msrb.gmra.mxu3 %v1799_v9  ;;  %887 = vmatmul.bf16.vlgmr.msrb.gmra.mxu1 %v1799_v9  ;;  %v1638_v19 = vld [vmem:[#allocation2 + $0x26c] sm:$0xf0]  ;;  %v1634_v22 = vld [vmem:[#allocation2 + $0x254] sm:$0xf]  ;;  %v1671_v3 = vld [vmem:[#allocation2 + $0x374] sm:$0xf0] }
  0x52   :  { %931 = vmatpush.bf16.msra.mxu1 %v1547_v15  ;;  %957 = vmatpush.bf16.msra.mxu3 %v1551_v20  ;;  %v1098_v15 = vld [vmem:[#allocation2 + $0x50] sm:$0xf]  ;;  %v1570_v20 = vld [vmem:[#allocation2 + $0x54] sm:$0xf]  ;;  %v1236_v5 = vld [vmem:[#allocation2 + $0x178] sm:$0xf0]  ;;  %v1491_v11 = vor.u32 %v1671_v3, %v1490_v1 }
  0x53   :  { %v1356_v23 = vld [vmem:[#allocation2 + $0x270] sm:$0xf0]  ;;  %v1099_v24 = vor.u32 %v1574_v16, %v1098_v15  ;;  %v1066_v25 = vld [vmem:[#allocation2 + $0x10] sm:$0xf]  ;;  %v1667_v6 = vld [vmem:[#allocation2 + $0x35c] sm:$0xf] }
  0x54   :  { %919 = vmatpush.bf16.msra.mxu0 %v1259_v26  ;;  %945 = vmatpush.bf16.msra.mxu2 %v1263_v28  ;;  %v1566_v26 = vld [vmem:[#allocation2 + $0x2c] sm:$0xf0]  ;;  %v1103_v28 = vor.u32 %v1570_v20, %v1100_v21  ;;  %v1562_v31 = vld [vmem:[#allocation2 + $0x14] sm:$0xf]  ;;  %v1492_v7 = vld [vmem:[#allocation2 + $0x378] sm:$0xf0] }
  0x55   :  { %v1322_v29 = vld [vmem:[#allocation2 + $0x210] sm:$0xf]  ;;  %v1068_v33 = vld [vmem:[#allocation2 + $0x30] sm:$0xf0]  ;;  %v1458_v15 = vld [vmem:[#allocation2 + $0x318] sm:$0xf]  ;;  %v1495_v16 = vor.u32 %v1667_v6, %v1492_v7 }
  0x56   :  { %932 = vmatpush.bf16.msra.mxu1 %v1515_v27  ;;  %958 = vmatpush.bf16.msra.mxu3 %v1519_v32  ;;  %v1355_v27 = vor.u32 %v1638_v19, %v1354_v17  ;;  %v1630_v30 = vld [vmem:[#allocation2 + $0x22c] sm:$0xf0]  ;;  %v1359_v32 = vor.u32 %v1634_v22, %v1356_v23  ;;  %v1626_v34 = vld [vmem:[#allocation2 + $0x214] sm:$0xf]  ;;  %v1663_v17 = vld [vmem:[#allocation2 + $0x334] sm:$0xf0] }
  0x57   :  { %v1324_v35 = vld [vmem:[#allocation2 + $0x230] sm:$0xf0]  ;;  %v1323_v43 = vor.u32 %v1630_v30, %v1322_v29  ;;  %v1204_v19 = vld [vmem:[#allocation2 + $0x138] sm:$0xf0]  ;;  %v1459_v23 = vor.u32 %v1663_v17, %v1458_v15  ;;  %v1655_v29 = vld [vmem:[#allocation2 + $0x2f4] sm:$0xf0] }
  0x58   :  { %920 = vmatpush.bf16.msra.mxu0 %v1227_v38  ;;  %946 = vmatpush.bf16.msra.mxu2 %v1231_v40  ;;  %v1554_v38 = vld [vmem:[#allocation2 + $0x3d8] sm:$0xf]  ;;  %v1327_v47 = vor.u32 %v1626_v34, %v1324_v35  ;;  %v1659_v20 = vld [vmem:[#allocation2 + $0x31c] sm:$0xf] }
  0x59   :  { %v1687_v40 = vld [vmem:[#allocation2 + $0x3f4] sm:$0xf0]  ;;  %v1460_v21 = vld [vmem:[#allocation2 + $0x338] sm:$0xf0] }
  0x5a   :  { %933 = vmatpush.bf16.msra.mxu1 %v1483_v39  ;;  %959 = vmatpush.bf16.msra.mxu3 %v1487_v44  ;;  %v1067_v39 = vor.u32 %v1566_v26, %v1066_v25  ;;  %v1071_v44 = vor.u32 %v1562_v31, %v1068_v33  ;;  %v1555_v49 = vor.u32 %v1687_v40, %v1554_v38  ;;  %v1170_v25 = vld [vmem:[#allocation2 + $0xd8] sm:$0xf]  ;;  %v1587_v30 = vld [vmem:[#allocation2 + $0xdc] sm:$0xf] }
  0x5b   :  { %v1591_v26 = vld [vmem:[#allocation2 + $0xf4] sm:$0xf0]  ;;  %v1172_v31 = vld [vmem:[#allocation2 + $0xf8] sm:$0xf0] }
  0x5c   :  { %921 = vmatpush.bf16.msra.mxu0 %v1195_v50  ;;  %947 = vmatpush.bf16.msra.mxu2 %v1199_v52  ;;  %v1303_v50 = vor.u32 %v1619_v41, %v1300_v42  ;;  %v1615_v52 = vld [vmem:[#allocation2 + $0x1b4] sm:$0xf0]  ;;  %v1428_v33 = vld [vmem:[#allocation2 + $0x2f8] sm:$0xf0]  ;;  %v1171_v34 = vor.u32 %v1591_v26, %v1170_v25  ;;  %v1175_v36 = vor.u32 %v1587_v30, %v1172_v31 }
  0x5d   :  { %v1138_v37 = vld [vmem:[#allocation2 + $0x98] sm:$0xf]  ;;  %v1579_v42 = vld [vmem:[#allocation2 + $0x9c] sm:$0xf] }
  0x5e   :  { %934 = vmatpush.bf16.msra.mxu1 %v1451_v51  ;;  %960 = vmatpush.bf16.msra.mxu3 %v1455_v56  ;;  %v1266_v51 = vld [vmem:[#allocation2 + $0x198] sm:$0xf]  ;;  %v1611_v56 = vld [vmem:[#allocation2 + $0x19c] sm:$0xf] }
  0x5f   :  { %v1267_v60 = vor.u32 %v1615_v52, %v1266_v51  ;;  %v1583_v38 = vld [vmem:[#allocation2 + $0xb4] sm:$0xf0]  ;;  %v1396_v45 = vld [vmem:[#allocation2 + $0x2b8] sm:$0xf0] }
  0x60   :  { %922 = vmatpush.bf16.msra.mxu0 %v1163_v62  ;;  %948 = vmatpush.bf16.msra.mxu2 %v1167_v0  ;;  %v1271_v62 = vor.u32 %v1611_v56, %v1268_v57  ;;  %v1607_v0 = vld [vmem:[#allocation2 + $0x174] sm:$0xf0]  ;;  %v1139_v46 = vor.u32 %v1583_v38, %v1138_v37  ;;  %v1108_v55 = vld [vmem:[#allocation2 + $0x78] sm:$0xf0] }
  0x61   :  { %v1647_v41 = vld [vmem:[#allocation2 + $0x2b4] sm:$0xf0]  ;;  %v1635_v56 = vld [vmem:[#allocation2 + $0x25c] sm:$0xf] }
  0x62   :  { %935 = vmatpush.bf16.msra.mxu1 %v1419_v63  ;;  %961 = vmatpush.bf16.msra.mxu3 %v1423_v4  ;;  %v1234_v63 = vld [vmem:[#allocation2 + $0x158] sm:$0xf]  ;;  %v1603_v4 = vld [vmem:[#allocation2 + $0x15c] sm:$0xf] }
  0x63   :  { %v1235_v10 = vor.u32 %v1607_v0, %v1234_v63  ;;  %v1362_v51 = vld [vmem:[#allocation2 + $0x258] sm:$0xf]  ;;  %v1364_v57 = vld [vmem:[#allocation2 + $0x278] sm:$0xf0] }
  0x64   :  { %923 = vmatpush.bf16.msra.mxu0 %v1131_v12  ;;  %949 = vmatpush.bf16.msra.mxu2 %v1135_v14  ;;  %v1239_v12 = vor.u32 %v1603_v4, %v1236_v5  ;;  %v1599_v14 = vld [vmem:[#allocation2 + $0x134] sm:$0xf0]  ;;  %v1367_v0 = vor.u32 %v1635_v56, %v1364_v57  ;;  %v1076_v3 = vld [vmem:[#allocation2 + $0x38] sm:$0xf0] }
  0x65   :  { %v1639_v53 = vld [vmem:[#allocation2 + $0x274] sm:$0xf0]  ;;  %v1627_v4 = vld [vmem:[#allocation2 + $0x21c] sm:$0xf] }
  0x66   :  { %936 = vmatpush.bf16.msra.mxu1 %v1387_v13  ;;  %962 = vmatpush.bf16.msra.mxu3 %v1391_v18  ;;  %v1202_v13 = vld [vmem:[#allocation2 + $0x118] sm:$0xf]  ;;  %v1595_v18 = vld [vmem:[#allocation2 + $0x11c] sm:$0xf]  ;;  %v1363_v59 = vor.u32 %v1639_v53, %v1362_v51 }
  0x67   :  { %v1203_v22 = vor.u32 %v1599_v14, %v1202_v13  ;;  %v1330_v63 = vld [vmem:[#allocation2 + $0x218] sm:$0xf]  ;;  %v1332_v5 = vld [vmem:[#allocation2 + $0x238] sm:$0xf0] }
  0x68   :  { %924 = vmatpush.bf16.msra.mxu0 %v1099_v24  ;;  %950 = vmatpush.bf16.msra.mxu2 %v1103_v28  ;;  %v1207_v24 = vor.u32 %v1595_v18, %v1204_v19  ;;  %v1463_v28 = vor.u32 %v1659_v20, %v1460_v21  ;;  %v1631_v1 = vld [vmem:[#allocation2 + $0x234] sm:$0xf0] }
  0x69   :  { %v1331_v7 = vor.u32 %v1631_v1, %v1330_v63 }
  0x6a   :  { %937 = vmatpush.bf16.msra.mxu1 %v1355_v27  ;;  %963 = vmatpush.bf16.msra.mxu3 %v1359_v32  ;;  %v1426_v27 = vld [vmem:[#allocation2 + $0x2d8] sm:$0xf]  ;;  %v1651_v32 = vld [vmem:[#allocation2 + $0x2dc] sm:$0xf] }
  0x6b   :  { %v1427_v35 = vor.u32 %v1655_v29, %v1426_v27  ;;  %v1431_v40 = vor.u32 %v1651_v32, %v1428_v33 }
  0x6c   :  { %925 = vmatpush.bf16.msra.mxu0 %v1067_v39  ;;  %951 = vmatpush.bf16.msra.mxu2 %v1071_v44  ;;  %v1394_v39 = vld [vmem:[#allocation2 + $0x298] sm:$0xf]  ;;  %v1643_v44 = vld [vmem:[#allocation2 + $0x29c] sm:$0xf] }
  0x6d   :  { %v1399_v52 = vor.u32 %v1643_v44, %v1396_v45 }
  0x6e   :  { %938 = vmatpush.bf16.msra.mxu1 %v1323_v43  ;;  %964 = vmatpush.bf16.msra.mxu3 %v1327_v47  ;;  %v1140_v43 = vld [vmem:[#allocation2 + $0xb8] sm:$0xf0]  ;;  %v1395_v47 = vor.u32 %v1647_v41, %v1394_v39 }
  0x6f   :  { %952 = vmatmul.bf16.vlgmr.msra.gmra.mxu2 %v1797_v8  ;;  %926 = vmatmul.bf16.vlgmr.msra.gmra.mxu0 %v1797_v8 }
  0x70   :  { %970 = vmatpush.bf16.msrb.mxu0 %v1299_v48  ;;  %996 = vmatpush.bf16.msrb.mxu2 %v1303_v50  ;;  %v1143_v48 = vor.u32 %v1579_v42, %v1140_v43  ;;  %v1575_v50 = vld [vmem:[#allocation2 + $0x74] sm:$0xf0] }
  0x71   :  { %965 = vmatmul.bf16.vlgmr.msra.gmra.mxu3 %v1799_v9  ;;  %939 = vmatmul.bf16.vlgmr.msra.gmra.mxu1 %v1799_v9 }
  0x72   :  { %983 = vmatpush.bf16.msrb.mxu1 %v1555_v49  ;;  %1009 = vmatpush.bf16.msrb.mxu3 %v1559_v54  ;;  %v1106_v49 = vld [vmem:[#allocation2 + $0x58] sm:$0xf]  ;;  %v1571_v54 = vld [vmem:[#allocation2 + $0x5c] sm:$0xf] }
  0x73   :  { %v1107_v58 = vor.u32 %v1575_v50, %v1106_v49 }
  0x74   :  { %971 = vmatpush.bf16.msrb.mxu0 %v1267_v60  ;;  %997 = vmatpush.bf16.msrb.mxu2 %v1271_v62  ;;  %v1111_v60 = vor.u32 %v1571_v54, %v1108_v55  ;;  %v1567_v62 = vld [vmem:[#allocation2 + $0x34] sm:$0xf0] }
  0x76   :  { %984 = vmatpush.bf16.msrb.mxu1 %v1523_v61  ;;  %1010 = vmatpush.bf16.msrb.mxu3 %v1527_v2  ;;  %v1074_v61 = vld [vmem:[#allocation2 + $0x18] sm:$0xf]  ;;  %v1563_v2 = vld [vmem:[#allocation2 + $0x1c] sm:$0xf] }
  0x77   :  { %v1075_v6 = vor.u32 %v1567_v62, %v1074_v61 }
  0x78   :  { %972 = vmatpush.bf16.msrb.mxu0 %v1235_v10  ;;  %998 = vmatpush.bf16.msrb.mxu2 %v1239_v12  ;;  %v1079_v10 = vor.u32 %v1563_v2, %v1076_v3 }
  0x7a   :  { %985 = vmatpush.bf16.msrb.mxu1 %v1491_v11  ;;  %1011 = vmatpush.bf16.msrb.mxu3 %v1495_v16  ;;  %v1335_v11 = vor.u32 %v1627_v4, %v1332_v5 }
  0x7c   :  { %973 = vmatpush.bf16.msrb.mxu0 %v1203_v22  ;;  %999 = vmatpush.bf16.msrb.mxu2 %v1207_v24 }
  0x7e   :  { %986 = vmatpush.bf16.msrb.mxu1 %v1459_v23  ;;  %1012 = vmatpush.bf16.msrb.mxu3 %v1463_v28 }
  0x80   :  { %974 = vmatpush.bf16.msrb.mxu0 %v1171_v34  ;;  %1000 = vmatpush.bf16.msrb.mxu2 %v1175_v36 }
  0x82   :  { %987 = vmatpush.bf16.msrb.mxu1 %v1427_v35  ;;  %1013 = vmatpush.bf16.msrb.mxu3 %v1431_v40 }
  0x84   :  { %975 = vmatpush.bf16.msrb.mxu0 %v1139_v46  ;;  %1001 = vmatpush.bf16.msrb.mxu2 %v1143_v48 }
  0x86   :  { %988 = vmatpush.bf16.msrb.mxu1 %v1395_v47  ;;  %1014 = vmatpush.bf16.msrb.mxu3 %v1399_v52 }
  0x88   :  { %976 = vmatpush.bf16.msrb.mxu0 %v1107_v58  ;;  %1002 = vmatpush.bf16.msrb.mxu2 %v1111_v60 }
  0x8a   :  { %989 = vmatpush.bf16.msrb.mxu1 %v1363_v59  ;;  %1015 = vmatpush.bf16.msrb.mxu3 %v1367_v0 }
  0x8c   :  { %977 = vmatpush.bf16.msrb.mxu0 %v1075_v6  ;;  %1003 = vmatpush.bf16.msrb.mxu2 %v1079_v10 }
  0x8e   :  { %990 = vmatpush.bf16.msrb.mxu1 %v1331_v7  ;;  %1016 = vmatpush.bf16.msrb.mxu3 %v1335_v11 }
  0x8f   :  { %978 = vmatmul.bf16.vlgmr.msrb.gmra.mxu0 %v1797_v8  ;;  %1004 = vmatmul.bf16.vlgmr.msrb.gmra.mxu2 %v1797_v8 }
  0x91   :  { %991 = vmatmul.bf16.vlgmr.msrb.gmra.mxu1 %v1799_v9  ;;  %1017 = vmatmul.bf16.vlgmr.msrb.gmra.mxu3 %v1799_v9 }
  0xac   :  { %v823_v13 = vpop.f32.mrf.mxu0 }
  0xae   :  { %v836_v12 = vpop.f32.mrf.mxu1 }
  0xaf   :  { %v837_v14 = vadd.f32 %v836_v12, %v823_v13 }
  0xb1   :  { %1022 = vst [vmem:[#allocation7] sm:$0xff] %v837_v14 }
  0xb2   :  { %v849_v15 = vpop.f32.mrf.mxu2 }
  0xb4   :  { %v862_v16 = vpop.f32.mrf.mxu3  ;;  %v825_v19 = vpop.f32.mrf.mxu0 }
  0xb5   :  { %v863_v17 = vadd.f32 %v862_v16, %v849_v15 }
  0xb6   :  { %v838_v18 = vpop.f32.mrf.mxu1 }
  0xb7   :  { %1023 = vst [vmem:[#allocation7 + $0x8] sm:$0xff] %v863_v17 }
  0xba   :  { %v851_v20 = vpop.f32.mrf.mxu2 }
  0xbc   :  { %v864_v21 = vpop.f32.mrf.mxu3 }
  0xcc   :  { %v875_v22 = vpop.f32.mrf.mxu0 }
  0xce   :  { %v888_v23 = vpop.f32.mrf.mxu1 }
  0xcf   :  { %v889_v24 = vadd.f32 %v888_v23, %v875_v22 }
  0xd1   :  { %1024 = vst [vmem:[#allocation7 + $0x10] sm:$0xff] %v889_v24 }
  0xd2   :  { %v901_v25 = vpop.f32.mrf.mxu2 }
  0xd4   :  { %v914_v8 = vpop.f32.mrf.mxu3  ;;  %v877_v9 = vpop.f32.mrf.mxu0 }
  0xd5   :  { %v915_v26 = vadd.f32 %v914_v8, %v901_v25 }
  0xd6   :  { %v890_v27 = vpop.f32.mrf.mxu1 }
  0xd7   :  { %1025 = vst [vmem:[#allocation7 + $0x18] sm:$0xff] %v915_v26 }
  0xda   :  { %v903_v28 = vpop.f32.mrf.mxu2 }
  0xdc   :  { %v916_v29 = vpop.f32.mrf.mxu3 }
  0xec   :  { %v927_v30 = vpop.f32.mrf.mxu0 }
  0xee   :  { %v940_v31 = vpop.f32.mrf.mxu1 }
  0xef   :  { %v941_v32 = vadd.f32 %v940_v31, %v927_v30 }
  0xf1   :  { %1026 = vst [vmem:[#allocation7 + $0x20] sm:$0xff] %v941_v32 }
  0xf2   :  { %v953_v33 = vpop.f32.mrf.mxu2 }
  0xf4   :  { %v966_v34 = vpop.f32.mrf.mxu3  ;;  %v929_v36 = vpop.f32.mrf.mxu0 }
  0xf5   :  { %v967_v35 = vadd.f32 %v966_v34, %v953_v33 }
  0xf6   :  { %v942_v37 = vpop.f32.mrf.mxu1 }
  0xf7   :  { %1027 = vst [vmem:[#allocation7 + $0x28] sm:$0xff] %v967_v35 }
  0xfa   :  { %v955_v38 = vpop.f32.mrf.mxu2 }
  0xfc   :  { %v968_v39 = vpop.f32.mrf.mxu3 }
 0x10c   :  { %v979_v40 = vpop.f32.mrf.mxu0 }
 0x10e   :  { %v992_v41 = vpop.f32.mrf.mxu1 }
 0x10f   :  { %v993_v42 = vadd.f32 %v992_v41, %v979_v40 }
 0x111   :  { %1028 = vst [vmem:[#allocation7 + $0x30] sm:$0xff] %v993_v42 }
 0x112   :  { %v1005_v43 = vpop.f32.mrf.mxu2 }
 0x114   :  { %v1018_v44 = vpop.f32.mrf.mxu3  ;;  %v981_v45 = vpop.f32.mrf.mxu0 }
 0x115   :  { %v1019_v46 = vadd.f32 %v1018_v44, %v1005_v43 }
 0x116   :  { %v994_v47 = vpop.f32.mrf.mxu1 }
 0x117   :  { %1029 = vst [vmem:[#allocation7 + $0x38] sm:$0xff] %v1019_v46 }
 0x118   :  { %1040 = dma.vmem_to_hbm [thread:$0]  %s1036_s1, 1024, %s1038_s23, [#allocation4]  }
 0x11a   :  { %v1007_v48 = vpop.f32.mrf.mxu2 }
 0x11c   :  { %v1020_v49 = vpop.f32.mrf.mxu3 }
 0x11d   :  { %1769 = dma.done.wait [#allocation4], 1024  }
 0x11e   :  { %1770 = vsyncadd [#allocation4], 4294966272 }
 0x11f   :  { %1045 = vsyncpa [#allocation3], 1 }
 0x120   :  { %1046 = vsyncpa [#allocation6], 1 }
 0x121   :  { %1047 = vsyncpa [#allocation4], 1 }

</bundles_post_ra>
